<compile_context>
chip_gen: v5e
topology: v5e:2x2
jax: 0.10.0
libtpu: 0.0.40
codegen_flags: <defaults>
</compile_context>

<pallas_src>
import functools

import numpy as np
import jax
import jax.numpy as jnp
from jax.experimental import pallas as pl
from jax.experimental.pallas import tpu as pltpu


# ----------------------------------------------------------------------------
# VMEM budgeting (re-derived per generation: v7x = 64 MiB physical per TC;
# v5e/v6e = 128 MiB physical).
# ----------------------------------------------------------------------------
def _vmem_limit_bytes():
    limit = 48 * 1024 * 1024          # safe on v7x (64 MiB physical) and below
    try:
        cap = int(getattr(pltpu.get_tpu_info(), "vmem_capacity_bytes", 0))
        if cap >= 128 * 1024 * 1024:  # v5e / v6e: 128 MiB physical
            limit = 96 * 1024 * 1024  # leave scoped-VMEM headroom for fusions
    except Exception:
        pass
    return limit


def _choose_tile_p(HW, C, frame_bytes, out_bytes, s_elem_bytes, vmem_limit):
    """Largest output-pixel tile (multiple of 128 dividing HW, or HW itself)
    such that the FULL VMEM picture (S slab + double-buffered frame / out /
    gx / gy blocks + ~20% Mosaic internal scratch) stays within vmem_limit."""
    usable = int(vmem_limit * 0.80)            # ~20% Mosaic internal scratch
    usable -= 2 * C * HW * frame_bytes         # double-buffered (1, C, HW) frame
    if usable <= 0:
        usable = vmem_limit // 8
    per_tile_p = (HW * s_elem_bytes            # S slab + i32 d + live temporaries
                  + 2 * C * out_bytes          # double-buffered (1, C, tile_p) out
                  + 2 * 2 * 4)                 # gx / gy blocks
    candidates = [HW] + [c for c in (4096, 2048, 1024, 512, 256, 128)
                         if c < HW and HW % c == 0]
    for cand in candidates:
        if cand * per_tile_p <= usable:
            return cand
    # TODO(synk): ragged HW / very large images -> switch to a 4-tap weighted
    # gather kernel; the dense fallback below may spill on v7x.
    for cand in (128, 256, 512, 1024, 2048, 4096):
        if HW % cand == 0:
            return cand
    return HW


def _s_build_dtype(compute_dtype):
    """In bf16 mode, build S directly in bf16 on chips with a bf16 VALU
    (v6e / v7x); keep f32 on v5e and older (cast only at the dot)."""
    if compute_dtype != jnp.bfloat16:
        return jnp.float32
    try:
        kind = jax.devices()[0].device_kind.lower()
    except Exception:
        kind = ""
    if any(tag in kind for tag in ("v2", "v3", "v4", "v5")):
        return jnp.float32
    return jnp.bfloat16


# ----------------------------------------------------------------------------
# Pallas kernel: bilinear grid_sample (align_corners=True, zero padding),
# tiled over output pixels, expressed as a dense bilinear-scatter matmul:
#     out[c, p] = sum_q frame[c, q] * S[q, p]
# ----------------------------------------------------------------------------
def _grid_sample_kernel(gx_ref, gy_ref, frame_ref, out_ref, *, H, W, s_dtype):
    HW = H * W
    gx = gx_ref[0]        # (1, TILE_P)  normalized x coords in [-1, 1]
    gy = gy_ref[0]        # (1, TILE_P)  normalized y coords in [-1, 1]
    frame = frame_ref[0]  # (C, HW)

    # Un-normalize (align_corners=True): x in [-1, 1] -> [0, W-1]
    ix = (gx + 1.0) * (0.5 * (W - 1))
    iy = (gy + 1.0) * (0.5 * (H - 1))

    ix0f = jnp.floor(ix)
    iy0f = jnp.floor(iy)
    tx = ix - ix0f
    ty = iy - iy0f
    ix0 = ix0f.astype(jnp.int32)
    iy0 = iy0f.astype(jnp.int32)
    ix1 = ix0 + 1
    iy1 = iy0 + 1

    # Per-corner weights, zeroed when the corner is out of bounds (zero padding).
    # All of these are cheap (1, TILE_P) tensors.
    def masked(w, xc, yc):
        inb = (xc >= 0) & (xc < W) & (yc >= 0) & (yc < H)
        return jnp.where(inb, w, 0.0).astype(s_dtype)

    w00 = masked((1.0 - ty) * (1.0 - tx), ix0, iy0)
    w01 = masked((1.0 - ty) * tx,         ix1, iy0)
    w10 = masked(ty * (1.0 - tx),         ix0, iy1)
    w11 = masked(ty * tx,                 ix1, iy1)

    flat00 = iy0 * W + ix0                                   # (1, TILE_P) i32
    TP = gx.shape[-1]
    q = jax.lax.broadcasted_iota(jnp.int32, (HW, TP), 0)     # input-pixel index
    d = q - flat00                                           # one (HW,TP) subtract

    zero = jnp.zeros((), s_dtype)
    # The four corners of flat00 sit at offsets {0, 1, W, W+1}; OOB corners have
    # their weight already masked to 0, so aliased offsets contribute nothing.
    S = jnp.where(d == 0, w00,
        jnp.where(d == 1, w01,
        jnp.where(d == W, w10,
        jnp.where(d == W + 1, w11, zero))))                  # (HW, TILE_P)

    if S.dtype != frame.dtype:
        S = S.astype(frame.dtype)
    out = jnp.dot(frame, S, preferred_element_type=jnp.float32)
    out_ref[0] = out.astype(out_ref.dtype)


def pallas_grid_sample(frames, gx, gy, precision="float32"):
    """frames: (B, C, H, W); gx, gy: (B, H, W) -> rotated frames (B, C, H, W).

    precision: "float32" (exact, default) or "bfloat16" (fast MXU path;
    ~1e-2 relative error from 8-bit bilinear weights)."""
    B, C, H, W = frames.shape
    HW = H * W

    compute_dtype = jnp.bfloat16 if precision == "bfloat16" else jnp.float32
    s_dtype = _s_build_dtype(compute_dtype)

    # Cast once in the wrapper: halves frame DMA bytes and the double-buffered
    # VMEM footprint in bf16 mode, and removes a per-grid-step (C, HW) cast.
    frames_flat = frames.reshape(B, C, HW).astype(compute_dtype)
    gx3 = gx.reshape(B, 1, HW).astype(jnp.float32)
    gy3 = gy.reshape(B, 1, HW).astype(jnp.float32)

    vmem_limit = _vmem_limit_bytes()
    frame_bytes = jnp.dtype(compute_dtype).itemsize
    out_bytes = jnp.dtype(frames.dtype).itemsize
    s_elem_bytes = 4 + 4 + jnp.dtype(s_dtype).itemsize    # i32 d + temp + S
    tile_p = _choose_tile_p(HW, C, frame_bytes, out_bytes, s_elem_bytes,
                            vmem_limit)
    if HW % tile_p != 0:
        tile_p = HW                                        # ragged fallback
    num_p = HW // tile_p

    # Megacore (v7x, 2 TCs): keep a shardable parallel axis of extent >= 2
    # even when B == 1 by splitting the pixel tiles into (2, num_p // 2).
    if B == 1 and num_p >= 2 and num_p % 2 == 0:
        n_outer, n_inner = 2, num_p // 2
    else:
        n_outer, n_inner = 1, num_p

    # Advisory cost estimate (post grid-reorder): the frame is read once per
    # batch, the S build costs ~8 VPU ops per (HW, TILE_P) element.
    flops = int(B * (2 * C * HW * HW + 8 * HW * HW))
    bytes_accessed = int(B * C * HW * frame_bytes      # frame read once / batch
                         + 2 * B * HW * 4              # gx, gy
                         + B * C * HW * out_bytes)     # output
    cost = pl.CostEstimate(flops=flops, transcendentals=0,
                           bytes_accessed=bytes_accessed)

    out_flat = pl.pallas_call(
        functools.partial(_grid_sample_kernel, H=H, W=W, s_dtype=s_dtype),
        out_shape=jax.ShapeDtypeStruct((B, C, HW), frames.dtype),
        # Batch leads, pixel tiles innermost: the frame block index (b, 0, 0)
        # is constant across consecutive steps -> Pallas skips the re-DMA.
        grid=(B, n_outer, n_inner),
        in_specs=[
            pl.BlockSpec((1, 1, tile_p), lambda b, o, i: (b, 0, o * n_inner + i)),
            pl.BlockSpec((1, 1, tile_p), lambda b, o, i: (b, 0, o * n_inner + i)),
            pl.BlockSpec((1, C, HW), lambda b, o, i: (b, 0, 0)),
        ],
        out_specs=pl.BlockSpec((1, C, tile_p),
                               lambda b, o, i: (b, 0, o * n_inner + i)),
        compiler_params=pltpu.CompilerParams(
            dimension_semantics=("parallel", "parallel", "arbitrary"),
            vmem_limit_bytes=vmem_limit),
        cost_estimate=cost,
    )(gx3, gy3, frames_flat)
    return out_flat.reshape(B, C, H, W)


# ----------------------------------------------------------------------------
# Glue: affine grid construction (torch.nn.functional.affine_grid equivalent)
# ----------------------------------------------------------------------------
def _build_grid_from_angles(angles, input_size, inverse, subsample=1):
    angles = np.asarray(angles, dtype=np.float32).reshape(-1)
    if subsample != 1:
        angles = angles[::subsample]
    if inverse:
        angles = -angles
    a = jnp.asarray(angles, dtype=jnp.float32)
    cos = jnp.cos(a)
    sin = jnp.sin(a)
    H = W = input_size
    xs = jnp.linspace(-1.0, 1.0, W, dtype=jnp.float32)   # varies along width
    ys = jnp.linspace(-1.0, 1.0, H, dtype=jnp.float32)   # varies along height
    X, Y = jnp.meshgrid(xs, ys)                          # (H, W)
    # theta = [[cos, sin, 0], [-sin, cos, 0]]  (same as the torch code)
    gx = cos[:, None, None] * X[None] + sin[:, None, None] * Y[None]
    gy = -sin[:, None, None] * X[None] + cos[:, None, None] * Y[None]
    return jnp.stack([gx, gy], axis=-1)                  # (N, H, W, 2)


# ----------------------------------------------------------------------------
# Glue: bicubic interpolation (F.interpolate mode='bicubic', align_corners=True)
# Only used when output_dimensions != input size (identity otherwise).
# ----------------------------------------------------------------------------
def _resize_matrix(in_size, out_size):
    a = -0.75
    if out_size > 1:
        src = np.arange(out_size) * (in_size - 1) / (out_size - 1)
    else:
        src = np.zeros((1,))
    i0 = np.floor(src).astype(np.int64)
    t = src - i0

    def w_near(x):  # |x| <= 1
        return (a + 2.0) * x ** 3 - (a + 3.0) * x ** 2 + 1.0

    def w_far(x):   # 1 < |x| < 2
        return a * x ** 3 - 5.0 * a * x ** 2 + 8.0 * a * x - 4.0 * a

    weights = np.stack([w_far(1.0 + t), w_near(t), w_near(1.0 - t), w_far(2.0 - t)],
                       axis=-1)
    idx = np.clip(i0[:, None] + np.arange(-1, 3)[None, :], 0, in_size - 1)
    M = np.zeros((out_size, in_size), dtype=np.float64)
    np.add.at(M, (np.arange(out_size)[:, None], idx), weights)
    return jnp.asarray(M, dtype=jnp.float32)


def bicubic_resize(x, out_hw):
    B, C, H, W = x.shape
    if tuple(out_hw) == (H, W):
        return x                                # identity resize: skip entirely
    My = _resize_matrix(H, out_hw[0])           # (out_h, H)
    Mx = _resize_matrix(W, out_hw[1])           # (out_w, W)
    return jnp.einsum('oh,bchw,pw->bcop', My, x, Mx)


# ----------------------------------------------------------------------------
# Model
# ----------------------------------------------------------------------------
class FieldRotationModel:
    def __init__(self, all_angles, input_size, subsample=1, inverse=False,
                 register_grid=False, precision="float32"):
        self.m_input_size = input_size
        self.m_inverse = inverse
        self.m_subsample = subsample
        self.m_register_grid = register_grid   # device placement is a no-op in JAX
        self.m_precision = precision
        self.m_grid = _build_grid_from_angles(all_angles, input_size, inverse,
                                              subsample)

    def __call__(self, frame_stack, parang_idx=None, new_angles=None,
                 output_dimensions=None):
        if parang_idx is None and new_angles is None:
            raise ValueError(
                'Either parang_idx or new_angles needs to be different from None.')
        if new_angles is None:
            idx = jnp.asarray(parang_idx).reshape(-1)
            if self.m_subsample != 1:
                idx = idx // self.m_subsample
            tmp_grid = self.m_grid[idx]                       # (B, H, W, 2)
        else:
            tmp_grid = _build_grid_from_angles(new_angles, self.m_input_size,
                                               self.m_inverse, 1)

        rotated = pallas_grid_sample(frame_stack.astype(jnp.float32),
                                     tmp_grid[..., 0], tmp_grid[..., 1],
                                     precision=self.m_precision)

        if output_dimensions is None:
            output_dimensions = (self.m_input_size, self.m_input_size)
        return bicubic_resize(rotated, tuple(output_dimensions))


# ----------------------------------------------------------------------------
# Pure-numpy reference grid_sample (bilinear, zeros, align_corners=True)
# ----------------------------------------------------------------------------
def _reference_grid_sample_np(frames, gx, gy):
    frames = np.asarray(frames, dtype=np.float64)
    gx = np.asarray(gx, dtype=np.float64)
    gy = np.asarray(gy, dtype=np.float64)
    B, C, H, W = frames.shape
    ix = (gx + 1.0) * 0.5 * (W - 1)
    iy = (gy + 1.0) * 0.5 * (H - 1)
    ix0 = np.floor(ix).astype(np.int64)
    iy0 = np.floor(iy).astype(np.int64)
    tx = ix - ix0
    ty = iy - iy0
    out = np.zeros_like(frames)
    b_idx = np.arange(B)[:, None, None]
    for dy, dx, w in ((0, 0, (1 - ty) * (1 - tx)), (0, 1, (1 - ty) * tx),
                      (1, 0, ty * (1 - tx)), (1, 1, ty * tx)):
        yy = iy0 + dy
        xx = ix0 + dx
        valid = (yy >= 0) & (yy < H) & (xx >= 0) & (xx < W)
        yyc = np.clip(yy, 0, H - 1)
        xxc = np.clip(xx, 0, W - 1)
        vals = frames[b_idx, :, yyc, xxc]           # (B, H, W, C)
        vals = np.moveaxis(vals, -1, 1)             # (B, C, H, W)
        out += (w * valid)[:, None, :, :] * vals
    return out


# ----------------------------------------------------------------------------
# Demo
# ----------------------------------------------------------------------------
if __name__ == "__main__":
    key = jax.random.PRNGKey(0)

    B, C, H, W = 2, 4, 16, 16
    n_angles = 8
    # Deterministic "parallactic angles" (interpreted as radians, like the torch code)
    all_angles = np.linspace(0.0, np.pi / 2.0, n_angles).astype(np.float32)

    model = FieldRotationModel(all_angles, input_size=H, subsample=1,
                               inverse=False, register_grid=False)

    frame_stack = jax.random.normal(key, (B, C, H, W), dtype=jnp.float32)
    parang_idx = jnp.array([0, 5], dtype=jnp.int32)

    out = model(frame_stack, parang_idx=parang_idx)
    out = jax.block_until_ready(out)
    assert out.shape == (B, C, H, W), out.shape

    # angle index 0 is a 0-rad rotation -> output frame 0 must equal input frame 0
    # (f32 default precision: exact up to f32 rounding)
    np.testing.assert_allclose(np.asarray(out[0]), np.asarray(frame_stack[0]),
                               atol=2e-3, rtol=2e-3)

    # full check against a pure-numpy grid_sample reference (f64)
    ref_grid = np.asarray(model.m_grid)[np.asarray(parang_idx)]
    ref = _reference_grid_sample_np(frame_stack, ref_grid[..., 0], ref_grid[..., 1])
    np.testing.assert_allclose(np.asarray(out), ref, atol=1e-4, rtol=1e-4)

    # exercise the fast bf16 path (loose tolerance: ~8-bit bilinear weights)
    model_bf16 = FieldRotationModel(all_angles, input_size=H, subsample=1,
                                    inverse=False, register_grid=False,
                                    precision="bfloat16")
    out_bf16 = jax.block_until_ready(model_bf16(frame_stack, parang_idx=parang_idx))
    assert out_bf16.shape == (B, C, H, W), out_bf16.shape
    np.testing.assert_allclose(np.asarray(out_bf16), ref, atol=3e-2, rtol=3e-2)

    # exercise the non-default (true bicubic) output_dimensions path
    out_small = model(frame_stack, parang_idx=parang_idx, output_dimensions=(8, 8))
    out_small = jax.block_until_ready(out_small)
    assert out_small.shape == (B, C, 8, 8), out_small.shape

    print("KERNEL_OK")
</pallas_src>

<mosaic_0001>
module attributes {stable_mosaic.version = 11 : i64} {
  func.func @_grid_sample_kernel(%arg0: i32, %arg1: i32, %arg2: i32, %arg3: memref<1x1x256xf32, #tpu.memory_space<vmem>>, %arg4: memref<1x1x256xf32, #tpu.memory_space<vmem>>, %arg5: memref<1x4x256xf32, #tpu.memory_space<vmem>>, %arg6: memref<1x4x256xf32, #tpu.memory_space<vmem>>) attributes {dimension_semantics = [#tpu.dimension_semantics<parallel>, #tpu.dimension_semantics<parallel>, #tpu.dimension_semantics<arbitrary>], iteration_bounds = array<i64: 2, 1, 1>, scalar_prefetch = 0 : i64, scratch_operands = 0 : i64, tpu.core_type = #tpu.core_type<tc>, window_params = [{transform_indices = @transform_0, window_bounds = array<i64: 1, 1, 256>}, {transform_indices = @transform_1, window_bounds = array<i64: 1, 1, 256>}, {transform_indices = @transform_2, window_bounds = array<i64: 1, 4, 256>}, {transform_indices = @transform_3, window_bounds = array<i64: 1, 4, 256>}]} {
    %c0 = arith.constant 0 : index
    %c0_0 = arith.constant 0 : index
    %c0_1 = arith.constant 0 : index
    %0 = vector.load %arg3[%c0, %c0_0, %c0_1] : memref<1x1x256xf32, #tpu.memory_space<vmem>>, vector<1x1x256xf32>
    %1 = vector.shape_cast %0 : vector<1x1x256xf32> to vector<1x256xf32>
    %c0_2 = arith.constant 0 : index
    %c0_3 = arith.constant 0 : index
    %c0_4 = arith.constant 0 : index
    %2 = vector.load %arg4[%c0_2, %c0_3, %c0_4] : memref<1x1x256xf32, #tpu.memory_space<vmem>>, vector<1x1x256xf32>
    %3 = vector.shape_cast %2 : vector<1x1x256xf32> to vector<1x256xf32>
    %c0_5 = arith.constant 0 : index
    %c0_6 = arith.constant 0 : index
    %c0_7 = arith.constant 0 : index
    %4 = vector.load %arg5[%c0_5, %c0_6, %c0_7] : memref<1x4x256xf32, #tpu.memory_space<vmem>>, vector<1x4x256xf32>
    %5 = vector.shape_cast %4 : vector<1x4x256xf32> to vector<4x256xf32>
    %cst = arith.constant 1.000000e+00 : f32
    %6 = vector.broadcast %cst : f32 to vector<1x256xf32>
    %7 = arith.addf %1, %6 : vector<1x256xf32>
    %cst_8 = arith.constant 7.500000e+00 : f32
    %8 = vector.broadcast %cst_8 : f32 to vector<1x256xf32>
    %9 = arith.mulf %7, %8 : vector<1x256xf32>
    %cst_9 = arith.constant 1.000000e+00 : f32
    %10 = vector.broadcast %cst_9 : f32 to vector<1x256xf32>
    %11 = arith.addf %3, %10 : vector<1x256xf32>
    %cst_10 = arith.constant 7.500000e+00 : f32
    %12 = vector.broadcast %cst_10 : f32 to vector<1x256xf32>
    %13 = arith.mulf %11, %12 : vector<1x256xf32>
    %14 = math.floor %9 : vector<1x256xf32>
    %15 = math.floor %13 : vector<1x256xf32>
    %16 = arith.subf %9, %14 : vector<1x256xf32>
    %17 = arith.subf %13, %15 : vector<1x256xf32>
    %18 = arith.fptosi %14 : vector<1x256xf32> to vector<1x256xi32>
    %19 = arith.fptosi %15 : vector<1x256xf32> to vector<1x256xi32>
    %c1_i32 = arith.constant 1 : i32
    %20 = vector.broadcast %c1_i32 : i32 to vector<1x256xi32>
    %21 = arith.addi %18, %20 : vector<1x256xi32>
    %c1_i32_11 = arith.constant 1 : i32
    %22 = vector.broadcast %c1_i32_11 : i32 to vector<1x256xi32>
    %23 = arith.addi %19, %22 : vector<1x256xi32>
    %cst_12 = arith.constant 1.000000e+00 : f32
    %24 = vector.broadcast %cst_12 : f32 to vector<1x256xf32>
    %25 = arith.subf %24, %17 : vector<1x256xf32>
    %cst_13 = arith.constant 1.000000e+00 : f32
    %26 = vector.broadcast %cst_13 : f32 to vector<1x256xf32>
    %27 = arith.subf %26, %16 : vector<1x256xf32>
    %28 = arith.mulf %25, %27 : vector<1x256xf32>
    %c0_i32 = arith.constant 0 : i32
    %29 = vector.broadcast %c0_i32 : i32 to vector<1x256xi32>
    %30 = arith.cmpi sge, %18, %29 : vector<1x256xi32>
    %c16_i32 = arith.constant 16 : i32
    %31 = vector.broadcast %c16_i32 : i32 to vector<1x256xi32>
    %32 = arith.cmpi slt, %18, %31 : vector<1x256xi32>
    %33 = arith.andi %30, %32 : vector<1x256xi1>
    %c0_i32_14 = arith.constant 0 : i32
    %34 = vector.broadcast %c0_i32_14 : i32 to vector<1x256xi32>
    %35 = arith.cmpi sge, %19, %34 : vector<1x256xi32>
    %36 = arith.andi %33, %35 : vector<1x256xi1>
    %c16_i32_15 = arith.constant 16 : i32
    %37 = vector.broadcast %c16_i32_15 : i32 to vector<1x256xi32>
    %38 = arith.cmpi slt, %19, %37 : vector<1x256xi32>
    %39 = arith.andi %36, %38 : vector<1x256xi1>
    %cst_16 = arith.constant 0.000000e+00 : f32
    %40 = vector.broadcast %cst_16 : f32 to vector<1x256xf32>
    %41 = arith.select %39, %28, %40 : vector<1x256xi1>, vector<1x256xf32>
    %cst_17 = arith.constant 1.000000e+00 : f32
    %42 = vector.broadcast %cst_17 : f32 to vector<1x256xf32>
    %43 = arith.subf %42, %17 : vector<1x256xf32>
    %44 = arith.mulf %43, %16 : vector<1x256xf32>
    %c0_i32_18 = arith.constant 0 : i32
    %45 = vector.broadcast %c0_i32_18 : i32 to vector<1x256xi32>
    %46 = arith.cmpi sge, %21, %45 : vector<1x256xi32>
    %c16_i32_19 = arith.constant 16 : i32
    %47 = vector.broadcast %c16_i32_19 : i32 to vector<1x256xi32>
    %48 = arith.cmpi slt, %21, %47 : vector<1x256xi32>
    %49 = arith.andi %46, %48 : vector<1x256xi1>
    %c0_i32_20 = arith.constant 0 : i32
    %50 = vector.broadcast %c0_i32_20 : i32 to vector<1x256xi32>
    %51 = arith.cmpi sge, %19, %50 : vector<1x256xi32>
    %52 = arith.andi %49, %51 : vector<1x256xi1>
    %c16_i32_21 = arith.constant 16 : i32
    %53 = vector.broadcast %c16_i32_21 : i32 to vector<1x256xi32>
    %54 = arith.cmpi slt, %19, %53 : vector<1x256xi32>
    %55 = arith.andi %52, %54 : vector<1x256xi1>
    %cst_22 = arith.constant 0.000000e+00 : f32
    %56 = vector.broadcast %cst_22 : f32 to vector<1x256xf32>
    %57 = arith.select %55, %44, %56 : vector<1x256xi1>, vector<1x256xf32>
    %cst_23 = arith.constant 1.000000e+00 : f32
    %58 = vector.broadcast %cst_23 : f32 to vector<1x256xf32>
    %59 = arith.subf %58, %16 : vector<1x256xf32>
    %60 = arith.mulf %17, %59 : vector<1x256xf32>
    %c0_i32_24 = arith.constant 0 : i32
    %61 = vector.broadcast %c0_i32_24 : i32 to vector<1x256xi32>
    %62 = arith.cmpi sge, %18, %61 : vector<1x256xi32>
    %c16_i32_25 = arith.constant 16 : i32
    %63 = vector.broadcast %c16_i32_25 : i32 to vector<1x256xi32>
    %64 = arith.cmpi slt, %18, %63 : vector<1x256xi32>
    %65 = arith.andi %62, %64 : vector<1x256xi1>
    %c0_i32_26 = arith.constant 0 : i32
    %66 = vector.broadcast %c0_i32_26 : i32 to vector<1x256xi32>
    %67 = arith.cmpi sge, %23, %66 : vector<1x256xi32>
    %68 = arith.andi %65, %67 : vector<1x256xi1>
    %c16_i32_27 = arith.constant 16 : i32
    %69 = vector.broadcast %c16_i32_27 : i32 to vector<1x256xi32>
    %70 = arith.cmpi slt, %23, %69 : vector<1x256xi32>
    %71 = arith.andi %68, %70 : vector<1x256xi1>
    %cst_28 = arith.constant 0.000000e+00 : f32
    %72 = vector.broadcast %cst_28 : f32 to vector<1x256xf32>
    %73 = arith.select %71, %60, %72 : vector<1x256xi1>, vector<1x256xf32>
    %74 = arith.mulf %17, %16 : vector<1x256xf32>
    %c0_i32_29 = arith.constant 0 : i32
    %75 = vector.broadcast %c0_i32_29 : i32 to vector<1x256xi32>
    %76 = arith.cmpi sge, %21, %75 : vector<1x256xi32>
    %c16_i32_30 = arith.constant 16 : i32
    %77 = vector.broadcast %c16_i32_30 : i32 to vector<1x256xi32>
    %78 = arith.cmpi slt, %21, %77 : vector<1x256xi32>
    %79 = arith.andi %76, %78 : vector<1x256xi1>
    %c0_i32_31 = arith.constant 0 : i32
    %80 = vector.broadcast %c0_i32_31 : i32 to vector<1x256xi32>
    %81 = arith.cmpi sge, %23, %80 : vector<1x256xi32>
    %82 = arith.andi %79, %81 : vector<1x256xi1>
    %c16_i32_32 = arith.constant 16 : i32
    %83 = vector.broadcast %c16_i32_32 : i32 to vector<1x256xi32>
    %84 = arith.cmpi slt, %23, %83 : vector<1x256xi32>
    %85 = arith.andi %82, %84 : vector<1x256xi1>
    %cst_33 = arith.constant 0.000000e+00 : f32
    %86 = vector.broadcast %cst_33 : f32 to vector<1x256xf32>
    %87 = arith.select %85, %74, %86 : vector<1x256xi1>, vector<1x256xf32>
    %c16_i32_34 = arith.constant 16 : i32
    %88 = vector.broadcast %c16_i32_34 : i32 to vector<1x256xi32>
    %89 = arith.muli %19, %88 : vector<1x256xi32>
    %90 = arith.addi %89, %18 : vector<1x256xi32>
    %91 = tpu.iota {dimensions = array<i32: 0>} : vector<256x256xi32>
    %92 = vector.broadcast %90 : vector<1x256xi32> to vector<256x256xi32>
    %93 = arith.subi %91, %92 : vector<256x256xi32>
    %c0_i32_35 = arith.constant 0 : i32
    %94 = vector.broadcast %c0_i32_35 : i32 to vector<256x256xi32>
    %95 = arith.cmpi eq, %93, %94 : vector<256x256xi32>
    %c1_i32_36 = arith.constant 1 : i32
    %96 = vector.broadcast %c1_i32_36 : i32 to vector<256x256xi32>
    %97 = arith.cmpi eq, %93, %96 : vector<256x256xi32>
    %c16_i32_37 = arith.constant 16 : i32
    %98 = vector.broadcast %c16_i32_37 : i32 to vector<256x256xi32>
    %99 = arith.cmpi eq, %93, %98 : vector<256x256xi32>
    %c17_i32 = arith.constant 17 : i32
    %100 = vector.broadcast %c17_i32 : i32 to vector<256x256xi32>
    %101 = arith.cmpi eq, %93, %100 : vector<256x256xi32>
    %cst_38 = arith.constant 0.000000e+00 : f32
    %102 = vector.shape_cast %87 : vector<1x256xf32> to vector<1x256xf32>
    %103 = vector.broadcast %102 : vector<1x256xf32> to vector<256x256xf32>
    %104 = vector.broadcast %cst_38 : f32 to vector<256x256xf32>
    %105 = arith.select %101, %103, %104 : vector<256x256xi1>, vector<256x256xf32>
    %106 = vector.shape_cast %73 : vector<1x256xf32> to vector<1x256xf32>
    %107 = vector.broadcast %106 : vector<1x256xf32> to vector<256x256xf32>
    %108 = arith.select %99, %107, %105 : vector<256x256xi1>, vector<256x256xf32>
    %109 = vector.shape_cast %57 : vector<1x256xf32> to vector<1x256xf32>
    %110 = vector.broadcast %109 : vector<1x256xf32> to vector<256x256xf32>
    %111 = arith.select %97, %110, %108 : vector<256x256xi1>, vector<256x256xf32>
    %112 = vector.shape_cast %41 : vector<1x256xf32> to vector<1x256xf32>
    %113 = vector.broadcast %112 : vector<1x256xf32> to vector<256x256xf32>
    %114 = arith.select %95, %113, %111 : vector<256x256xi1>, vector<256x256xf32>
    %cst_39 = arith.constant dense<0.000000e+00> : vector<4x256xf32>
    %115 = tpu.matmul %5, %114, %cst_39 {dimension_numbers = #tpu.dot_dimension_numbers<[1], [0], [0], [1], [0, 0, 1, 1], [], []>} : vector<4x256xf32>, vector<256x256xf32>, vector<4x256xf32> -> vector<4x256xf32>
    %c0_40 = arith.constant 0 : index
    %c0_41 = arith.constant 0 : index
    %c0_42 = arith.constant 0 : index
    %116 = vector.load %arg6[%c0_40, %c0_41, %c0_42] : memref<1x4x256xf32, #tpu.memory_space<vmem>>, vector<1x4x256xf32>
    %117 = vector.shape_cast %116 : vector<1x4x256xf32> to vector<4x256xf32>
    %118 = vector.shape_cast %115 : vector<4x256xf32> to vector<1x4x256xf32>
    tpu.vector_store %arg6[%c0_40, %c0_41, %c0_42], %118 {strides = array<i32>} : memref<1x4x256xf32, #tpu.memory_space<vmem>>, vector<1x4x256xf32>,
    return
  }
  func.func @transform_0(%arg0: i32, %arg1: i32, %arg2: i32) -> (i32, i32, i32) {
    %c1_i32 = arith.constant 1 : i32
    %0 = arith.muli %arg1, %c1_i32 : i32
    %1 = arith.addi %0, %arg2 : i32
    %c0_i32 = arith.constant 0 : i32
    %c0_i32_0 = arith.constant 0 : i32
    return %arg0, %c0_i32, %1 : i32, i32, i32
  }
  func.func @transform_1(%arg0: i32, %arg1: i32, %arg2: i32) -> (i32, i32, i32) {
    %c1_i32 = arith.constant 1 : i32
    %0 = arith.muli %arg1, %c1_i32 : i32
    %1 = arith.addi %0, %arg2 : i32
    %c0_i32 = arith.constant 0 : i32
    %c0_i32_0 = arith.constant 0 : i32
    return %arg0, %c0_i32, %1 : i32, i32, i32
  }
  func.func @transform_2(%arg0: i32, %arg1: i32, %arg2: i32) -> (i32, i32, i32) {
    %c0_i32 = arith.constant 0 : i32
    %c0_i32_0 = arith.constant 0 : i32
    %c0_i32_1 = arith.constant 0 : i32
    return %arg0, %c0_i32, %c0_i32_0 : i32, i32, i32
  }
  func.func @transform_3(%arg0: i32, %arg1: i32, %arg2: i32) -> (i32, i32, i32) {
    %c1_i32 = arith.constant 1 : i32
    %0 = arith.muli %arg1, %c1_i32 : i32
    %1 = arith.addi %0, %arg2 : i32
    %c0_i32 = arith.constant 0 : i32
    %c0_i32_0 = arith.constant 0 : i32
    return %arg0, %c0_i32, %1 : i32, i32, i32
  }
}

</mosaic_0001>

<bundles_post_ra>
// kernel: tpu_custom_call.1
= control target key start
LH: loop header
LB: loop body
LE: loop exit
PB: predicated region body
PF: predicated region fallthrough
CT: control target
= control target key end

     0   :  { %s2298_s0 = inlined_call_operand.hbm [shape: f32[2,1,256], index: 0, kind: input, shape index: {}]   ;;  %s2299_s1 = inlined_call_operand.hbm [shape: f32[2,1,256], index: 1, kind: input, shape index: {}]   ;;  %s2300_s2 = inlined_call_operand.hbm [shape: f32[2,4,256], index: 2, kind: input, shape index: {}]   ;;  %s2301_s3 = inlined_call_operand.hbm [shape: f32[2,4,256], index: 3, kind: output, shape index: {}]  }
   0x1   :  { %2307 = sst [smem:[#allocation17_spill]] %s2299_s1 }
   0x2   :  { %8 = vsyncpa [#allocation3], 0 }
   0x3   :  { %10 = vsyncpa [#allocation3 + $0x1], 0 }
   0x4   :  { %11 = vsyncpa [#allocation6], 0 }
   0x5   :  { %13 = vsyncpa [#allocation6 + $0x1], 0 }
   0x6   :  { %14 = vsyncpa [#allocation4], 0 }
   0x7   :  { %16 = vsyncpa [#allocation4 + $0x1], 0  ;;  %s1527_s12 = smov 0   ;;  %s1529_s13 = smov 0  }
   0x8   :  { %s1531_s14 = smov 0   ;;  %s1533_s15 = smov 0  }
   0x9   :  { %s1535_s16 = smov 0   ;;  %s1537_s17 = smov 0  }
   0xa LB: > { %2308 = sst [smem:[#allocation12_spill]] %s1493_s14  ;;  %s1558_s18 = sadd.s32 4294967295, %s1505_s17   ;;  %s1505_s17 = sphi %s1537_s17, %s22_s17   ;;  %s1501_s16 = sphi %s1535_s16, %s2333_s16   ;;  %s1497_s15 = sphi %s1533_s15, %s2332_s15   ;;  %s1493_s14 = sphi %s1531_s14, %s2331_s14   ;;  %s1489_s13 = sphi %s1529_s13, %s2330_s13   ;;  %s1485_s12 = sphi %s1527_s12, %s2329_s12  }
   0xb   : > { %2309 = sst [smem:[#allocation13_spill]] %s1505_s17  ;;  %s1231_s19 = sadd.s32 4294967294, %s1505_s17  }
   0xc   : > { %s41_s20 = sadd.s32 1, %s1501_s16  ;;  %s52_s21 = sadd.s32 1, %s1493_s14 }
   0xd   : > { %p43_p0 = scmp.ge.s32.totalorder %s41_s20, 2  ;;  %p59_p1 = scmp.ne.s32.totalorder %s1493_s14, %s1489_s13 }
   0xe   : > { %p60_p2 = scmp.eq.s32.totalorder %s1505_s17, 0  ;;  %p65_p3 = scmp.ne.s32.totalorder %s1489_s13, %s1485_s12 }
   0xf   : > { %s2335_s20 = smov (%p43_p0, %s41_s20), 0  ;;  %p66_p5 = scmp.eq.s32.totalorder %s1558_s18, 0 }
  0x10   : > { %2310 = sst [smem:[#allocation14_spill]] %s2335_s20  ;;  %p1570_p4 = por %p60_p2, %p59_p1 }
  0x11   : > { %s47_s23 = ssub.s32 %s1501_s16, %s2335_s20  ;;  %p149_p6 = scmp.eq.s32.totalorder %s1558_s18, 1 }
  0x12   : > { %p50_p7 = scmp.eq.s32.totalorder %s47_s23, 0  ;;  %p1578_p8 = por %p66_p5, %p65_p3 }
  0x13   : > { %p1582_p9 = por %p149_p6, %p59_p1  ;;  %p155_p10 = scmp.eq.s32.totalorder %s1231_s19, 1 }
  0x14   : > { %s1587_s26 = scalar_select %p50_p7, %s1493_s14, %s52_s21  }
  0x15   : > { %p1589_p11 = por %p155_p10, %p65_p3  ;;  %p1233_p12 = scmp.ge.s32.totalorder %s1505_s17, 2 }
  0x16   : > { %2314 = sst [smem:[#allocation15_spill]] %s1587_s26  ;;  %p1279_p13 = scmp.lt.s32.totalorder %s1505_s17, 2 }
  0x17   : > { %s2315_s27 = scalar_select %p1589_p11, 1, 0 }
  0x18   : > { %s175_s28 = sand.u32 1, %s1493_s14   ;;  %s1235_s30 = sshll.u32 %s1501_s16, 1 }
  0x19   : > { %2316 = sst [smem:[#allocation16_spill]] %s2315_s27  ;;  %s1234_s29 = sshll.u32 %s175_s28, 1 }
  0x1a   : > { %p1599_p0 = pnand %p1279_p13, %p1570_p4  ;;  %s197_s5 = sand.u32 1, %s1505_s17  }
  0x1b   : > { %s2318_s1 = sld [smem:[#allocation17_spill]]  ;;  %s201_s10 = scalar_lea.vmem [#allocation5], %s1234_s29 }
  0x1c   : > { %s212_s11 = sshll.u32 %s201_s10, 4  ;;  %s198_s19 = scalar_lea.sflag [#allocation6], %s197_s5  ;;  %s213_s11 = int_to_ptr.vmem [resolvable:$true] %s212_s11 }
  0x1d   : > { %p1241_p1 = scmp.ge.s32.totalorder %s1505_s17, 1  ;;  %p237_p2 = scmp.lt.s32.totalorder %s1505_s17, 3 }
  0x1e   : > { %s186_s6 = scalar_lea.hbm %s2298_s0, %s1235_s30  ;;  %s1238_s5 = sshll.u32 %s175_s28, 3 }
  0x1f   : > { %p1611_p3 = pnand %p1241_p1, %p237_p2  ;;  %s188_s7 = sshll.u32 %s186_s6, 4  ;;  %s189_s7 = int_to_ptr.hbm [resolvable:$true] %s188_s7 }
  0x20   : > { %s223_s17 = scalar_lea.vmem [#allocation7], %s1238_s5 }
  0x21   : > { %s208_s8 = scalar_lea.hbm %s2318_s1, %s1235_s30  ;;  %s176_s1 = scalar_lea.sflag [#allocation3], %s175_s28 }
  0x22   : > { %s210_s9 = sshll.u32 %s208_s8, 4  ;;  %s179_s8 = scalar_lea.vmem [#allocation2], %s1234_s29  ;;  %s211_s9 = int_to_ptr.hbm [resolvable:$true] %s210_s9 }
  0x23   : > { %1271 = dma.hbm_to_vmem [thread:$0]  (!%p1599_p0), %s211_s9, 32, %s213_s11, %s198_s19  }
  0x24   : > { %s190_s10 = sshll.u32 %s179_s8, 4  ;;  %s1251_s9 = sshll.u32 %s1501_s16, 3  ;;  %s191_s10 = int_to_ptr.vmem [resolvable:$true] %s190_s10 }
  0x25   : > { %1268 = dma.hbm_to_vmem [thread:$0]  (!%p1599_p0), %s189_s7, 32, %s191_s10, %s176_s1  }
  0x26   : > { %s228_s26 = scalar_lea.hbm %s2300_s2, %s1251_s9  ;;  %s232_s27 = sshll.u32 %s223_s17, 4  ;;  %s233_s27 = int_to_ptr.vmem [resolvable:$true] %s232_s27 }
  0x27   : > { %s230_s14 = sshll.u32 %s228_s26, 4  ;;  %241 = sbr.rel (%p1611_p3) target bundleno = 352 (0x160), region = 32  ;;  %s231_s14 = int_to_ptr.hbm [resolvable:$true] %s230_s14 }
  0x28   : > { %1274 = dma.hbm_to_vmem [thread:$0]  (!%p1599_p0), %s231_s14, 128, %s233_s27, %s198_s19  }
  0x29   : > { %s1629_s29 = sand.u32 (!%p1611_p3), 1, %s1489_s13  }
  0x2a   : > { %s1242_s1 = sshll.u32 (!%p1611_p3), %s1629_s29, 1  ;;  %s244_s28 = scalar_lea.sflag (!%p1611_p3), [#allocation3], %s1629_s29 }
  0x2b   : > { %s247_s20 = scalar_lea.vmem (!%p1611_p3), [#allocation2], %s1242_s1 }
  0x2c   : > { %1472 = dma.done.wait (%p1578_p8), %s244_s28, 32  }
  0x2d   : > { %1474 = vsyncadd (%p1578_p8), %s244_s28, 4294967264  ;;  %s253_s14 = sand.u32 1, %s1558_s18   ;;  %s257_s26 = scalar_lea.vmem [#allocation5], %s1242_s1 }
  0x2e   : > { %s254_s17 = scalar_lea.sflag [#allocation6], %s253_s14 }
  0x2f   : > { %1476 = dma.done.wait (%p1578_p8), %s254_s17, 160  }
  0x30   : > { %1478 = vsyncadd (%p1578_p8), %s254_s17, 4294967136  ;;  %s1244_s27 = sshll.u32 %s1629_s29, 3  ;;  %v307_v0 = vld [vmem:[%s247_s20] sm:$0x3]  ;;  %v308_v1 = vld [vmem:[%s257_s26] sm:$0x3]  ;;  %v352_v7 = vlaneseq }
  0x31   : > { %s267_s30 = scalar_lea.vmem [#allocation7], %s1244_s27  ;;  %v310_v3 = vadd.f32 1.0, %v307_v0  ;;  %v312_v4 = vadd.f32 1.0, %v308_v1  ;;  %s1252_s18 = sshll.u32 %s1497_s15, 3 }
  0x32   : > { %v309_v2 = vld [vmem:[%s267_s30] sm:$0xff]  ;;  %v1645_v14 = vshrl.u32 %v352_v7, 7  ;;  %s1091_s19 = scalar_lea.hbm %s2301_s3, %s1252_s18  ;;  %s300_s21 = scalar_lea.vmem [#allocation8], %s1244_s27 }
  0x33   : > { %984 = vst [vmem:[#allocation1] ss:$2 sm:$0xff] %v309_v2  ;;  %v311_v5 = vmul.f32 7.5, %v310_v3  ;;  %v313_v6 = vmul.f32 7.5, %v312_v4  ;;  %s1093_s22 = sshll.u32 %s300_s21, 4  ;;  %s1095_s23 = sshll.u32 %s1091_s19, 4  ;;  %s1094_s22 = int_to_ptr.vmem [resolvable:$true] %s1093_s22  ;;  %s1096_s23 = int_to_ptr.hbm [resolvable:$true] %s1095_s23 }
  0x34   : > { %v1655_v21 = vadd.s32 120, %v1645_v14  ;;  %v1658_v22 = vadd.s32 248, %v1645_v14  ;;  %v1661_v23 = vadd.s32 112, %v1645_v14  ;;  %v1665_v26 = vadd.s32 240, %v1645_v14  ;;  %s1077_s15 = scalar_lea.sflag [#allocation4], %s1629_s29  ;;  %s1433_s6 = sshra.s32 %s1096_s23, 4  ;;  %s1434_s6 = int_to_ptr.hbm [resolvable:$true] %s1433_s6 }
  0x35   : > { %v314_v8 = vfloor.f32 %v311_v5  ;;  %v315_v9 = vfloor.f32 %v313_v6  ;;  %v1668_v27 = vadd.s32 104, %v1645_v14  ;;  %v1675_v30 = vadd.s32 232, %v1645_v14  ;;  %s1435_s7 = scalar_lea.hbm %s1434_s6, 8  ;;  %s1439_s5 = scalar_lea.hbm %s2301_s3, 16 }
  0x36   : > { %v1678_v31 = vadd.s32 96, %v1645_v14  ;;  %v1684_v34 = vadd.s32 224, %v1645_v14  ;;  %v1690_v37 = vadd.s32 88, %v1645_v14  ;;  %v1693_v38 = vadd.s32 216, %v1645_v14  ;;  %p1436_p4 = scmp.ne.s32.totalorder %s1434_s6, %s1435_s7  ;;  %p1440_p7 = scmp.lt.s32.totalorder %s1434_s6, %s2301_s3 }
  0x37   : > { %v316_v10 = vsub.f32 %v311_v5, %v314_v8  ;;  %v317_v11 = vsub.f32 %v313_v6, %v315_v9  ;;  %v1254_v12 = vcvt.f32.s32 %v314_v8  ;;  %v1256_v13 = vcvt.f32.s32 %v315_v9  ;;  %p1441_p8 = scmp.lt.s32.totalorder %s1439_s5, %s1435_s7 }
  0x38   : > { %v1703_v42 = vadd.s32 80, %v1645_v14  ;;  %v1713_v46 = vadd.s32 208, %v1645_v14  ;;  %p1437_p5 = pnand %p1436_p4, %p1582_p9 }
  0x39   : > { %v320_v15 = vadd.s32 1, %v1254_v12  ;;  %v321_v16 = vadd.s32 1, %v1256_v13  ;;  %v322_v17 = vsub.f32 1.0, %v317_v11  ;;  %v323_v18 = vsub.f32 1.0, %v316_v10  ;;  %p1442_p10 = por %p1441_p8, %p1440_p7 }
  0x3a   : > { %vm325_vm0 = vcmp.ge.s32.totalorder %v1254_v12, 0  ;;  %vm326_vm1 = vcmp.lt.s32.totalorder %v1254_v12, 16  ;;  %vm328_vm2 = vcmp.ge.s32.totalorder %v1256_v13, 0  ;;  %vm330_vm3 = vcmp.lt.s32.totalorder %v1256_v13, 16  ;;  %p1438_p6 = pneg %p1437_p5 }
  0x3b   : > { %v324_v19 = vmul.f32 %v323_v18, %v322_v17  ;;  %vm1647_vm4 = vmand %vm325_vm0, %vm326_vm1  ;;  %vm334_vm5 = vcmp.ge.s32.totalorder %v320_v15, 0  ;;  %vm335_vm6 = vcmp.lt.s32.totalorder %v320_v15, 16  ;;  %v333_v24 = vmul.f32 %v322_v17, %v316_v10 }
  0x3c   : > { %vm329_vm7 = vmand %vm1647_vm4, %vm328_vm2  ;;  %v350_v25 = vmul.u32 16, %v1256_v13  ;;  %vm341_vm10 = vcmp.ge.s32.totalorder %v321_v16, 0  ;;  %v340_v32 = vmul.f32 %v323_v18, %v317_v11  ;;  %vm343_vm12 = vcmp.lt.s32.totalorder %v321_v16, 16  ;;  %p1443_p13 = pnand %p1442_p10, %p1438_p6 }
  0x3d   : > { %vm331_vm8 = vmand %vm329_vm7, %vm330_vm3  ;;  %v346_v35 = vmul.f32 %v317_v11, %v316_v10 }
  0x3e   : > { %v332_v28 = vsel %vm331_vm8, %v324_v19, 0.0  ;;  %vm1670_vm9 = vmand %vm334_vm5, %vm335_vm6  ;;  %v351_v33 = vadd.s32 %v1254_v12, %v350_v25 }
  0x3f   : > { %vm337_vm11 = vmand %vm1670_vm9, %vm328_vm2  ;;  %v1687_v36 = vperm.slane %v332_v28, 0  ;;  %v1700_v41 = vperm.slane %v332_v28, 1 }
  0x40   : > { %vm338_vm13 = vmand %vm337_vm11, %vm330_vm3  ;;  %v1698_v40 = vperm.slane %v351_v33, 1  ;;  %v1706_v43 = vperm.slane %v351_v33, 0 }
  0x41   : > { %v339_v39 = vsel %vm338_vm13, %v333_v24, 0.0  ;;  %vm342_vm14 = vmand %vm1647_vm4, %vm341_vm10 }
  0x42   : > { %vm344_vm15 = vmand %vm342_vm14, %vm343_vm12  ;;  %v1708_v44 = vperm.slane %v339_v39, 0  ;;  %v1710_v45 = vperm.slane %v339_v39, 1  ;;  %v418_v48 = vsub.s32 %v1655_v21, %v1698_v40  ;;  %v450_v49 = vsub.s32 %v1658_v22, %v1698_v40 }
  0x43   : > { %v345_v47 = vsel %vm344_vm15, %v340_v32, 0.0  ;;  %vm347_vm0 = vmand %vm1670_vm9, %vm341_vm10  ;;  %v416_v50 = vsub.s32 %v1661_v23, %v1698_v40  ;;  %v448_v53 = vsub.s32 %v1665_v26, %v1698_v40  ;;  %v414_v54 = vsub.s32 %v1668_v27, %v1698_v40 }
  0x44   : > { %vm348_vm1 = vmand %vm347_vm0, %vm343_vm12  ;;  %v1725_v51 = vperm.slane %v345_v47, 0  ;;  %v1727_v52 = vperm.slane %v345_v47, 1  ;;  %vm482_vm2 = vcmp.eq.s32.totalorder %v418_v48, 0  ;;  %vm546_vm3 = vcmp.eq.s32.totalorder %v418_v48, 1 }
  0x45   : > { %v349_v55 = vsel %vm348_vm1, %v346_v35, 0.0  ;;  %vm610_vm4 = vcmp.eq.s32.totalorder %v418_v48, 16  ;;  %vm674_vm5 = vcmp.eq.s32.totalorder %v418_v48, 17  ;;  %vm514_vm6 = vcmp.eq.s32.totalorder %v450_v49, 0 }
  0x46   : > { %v1733_v56 = vperm.slane %v349_v55, 0  ;;  %v1735_v57 = vperm.slane %v349_v55, 1  ;;  %vm578_vm7 = vcmp.eq.s32.totalorder %v450_v49, 1  ;;  %vm642_vm8 = vcmp.eq.s32.totalorder %v450_v49, 16 }
  0x47   : > { %vm706_vm9 = vcmp.eq.s32.totalorder %v450_v49, 17  ;;  %vm480_vm10 = vcmp.eq.s32.totalorder %v416_v50, 0  ;;  %vm544_vm11 = vcmp.eq.s32.totalorder %v416_v50, 1  ;;  %vm608_vm12 = vcmp.eq.s32.totalorder %v416_v50, 16 }
  0x48   : > { %v743_v58 = vsel %vm674_vm5, %v1735_v57, 0.0  ;;  %v775_v59 = vsel %vm706_vm9, %v1735_v57, 0.0  ;;  %vm672_vm13 = vcmp.eq.s32.totalorder %v416_v50, 17  ;;  %vm512_vm14 = vcmp.eq.s32.totalorder %v448_v53, 0 }
  0x49   : > { %v812_v60 = vsel %vm610_vm4, %v1727_v52, %v743_v58  ;;  %v844_v61 = vsel %vm642_vm8, %v1727_v52, %v775_v59  ;;  %v741_v0 = vsel %vm672_vm13, %v1735_v57, 0.0  ;;  %vm576_vm15 = vcmp.eq.s32.totalorder %v448_v53, 1 }
  0x4a   : > { %v881_v62 = vsel %vm546_vm3, %v1710_v45, %v812_v60  ;;  %v913_v63 = vsel %vm578_vm7, %v1710_v45, %v844_v61  ;;  %v810_v3 = vsel %vm608_vm12, %v1727_v52, %v741_v0  ;;  %vm640_vm0 = vcmp.eq.s32.totalorder %v448_v53, 16 }
  0x4b   : > { %v950_v1 = vsel %vm482_vm2, %v1700_v41, %v881_v62  ;;  %v982_v2 = vsel %vm514_vm6, %v1700_v41, %v913_v63  ;;  %v879_v4 = vsel %vm544_vm11, %v1710_v45, %v810_v3  ;;  %vm704_vm1 = vcmp.eq.s32.totalorder %v448_v53, 17 }
  0x4c   : > { %1029 = vmatpush.msra.mxu2 %v950_v1  ;;  %1049 = vmatpush.msra.mxu3 %v982_v2  ;;  %vm478_vm3 = vcmp.eq.s32.totalorder %v414_v54, 0  ;;  %vm542_vm4 = vcmp.eq.s32.totalorder %v414_v54, 1  ;;  %v948_v5 = vsel %vm480_vm10, %v1700_v41, %v879_v4  ;;  %v773_v6 = vsel %vm704_vm1, %v1735_v57, 0.0 }
  0x4d   : > { %vm606_vm2 = vcmp.eq.s32.totalorder %v414_v54, 16  ;;  %vm670_vm5 = vcmp.eq.s32.totalorder %v414_v54, 17  ;;  %v842_v7 = vsel %vm640_vm0, %v1727_v52, %v773_v6  ;;  %v446_v9 = vsub.s32 %v1675_v30, %v1698_v40 }
  0x4e   : > { %1030 = vmatpush.msra.mxu2 %v948_v5  ;;  %v739_v8 = vsel %vm670_vm5, %v1735_v57, 0.0  ;;  %v412_v10 = vsub.s32 %v1678_v31, %v1698_v40  ;;  %v911_v11 = vsel %vm576_vm15, %v1710_v45, %v842_v7  ;;  %v444_v13 = vsub.s32 %v1684_v34, %v1698_v40 }
  0x4f   : > { %v808_v12 = vsel %vm606_vm2, %v1727_v52, %v739_v8  ;;  %v417_v15 = vsub.s32 %v1655_v21, %v1706_v43  ;;  %v980_v16 = vsel %vm512_vm14, %v1700_v41, %v911_v11  ;;  %vm510_vm6 = vcmp.eq.s32.totalorder %v446_v9, 0 }
  0x50   : > { %v877_v17 = vsel %vm542_vm4, %v1710_v45, %v808_v12  ;;  %vm574_vm7 = vcmp.eq.s32.totalorder %v446_v9, 1  ;;  %1050 = vmatpush.msra.mxu3 %v980_v16  ;;  %vm638_vm8 = vcmp.eq.s32.totalorder %v446_v9, 16  ;;  %vm702_vm9 = vcmp.eq.s32.totalorder %v446_v9, 17 }
  0x51   : > { %v946_v18 = vsel %vm478_vm3, %v1700_v41, %v877_v17  ;;  %vm476_vm10 = vcmp.eq.s32.totalorder %v412_v10, 0  ;;  %v771_v19 = vsel %vm702_vm9, %v1735_v57, 0.0  ;;  %vm540_vm11 = vcmp.eq.s32.totalorder %v412_v10, 1 }
  0x52   : > { %1031 = vmatpush.msra.mxu2 %v946_v18  ;;  %vm604_vm12 = vcmp.eq.s32.totalorder %v412_v10, 16  ;;  %vm668_vm13 = vcmp.eq.s32.totalorder %v412_v10, 17  ;;  %v840_v20 = vsel %vm638_vm8, %v1727_v52, %v771_v19  ;;  %vm508_vm14 = vcmp.eq.s32.totalorder %v444_v13, 0 }
  0x53   : > { %v737_v21 = vsel %vm668_vm13, %v1735_v57, 0.0  ;;  %vm572_vm15 = vcmp.eq.s32.totalorder %v444_v13, 1  ;;  %v909_v24 = vsel %vm574_vm7, %v1710_v45, %v840_v20  ;;  %vm636_vm0 = vcmp.eq.s32.totalorder %v444_v13, 16 }
  0x54   : > { %v806_v25 = vsel %vm604_vm12, %v1727_v52, %v737_v21  ;;  %vm700_vm1 = vcmp.eq.s32.totalorder %v444_v13, 17  ;;  %v978_v28 = vsel %vm510_vm6, %v1700_v41, %v909_v24  ;;  %vm481_vm3 = vcmp.eq.s32.totalorder %v417_v15, 0 }
  0x55   : > { %v875_v29 = vsel %vm540_vm11, %v1710_v45, %v806_v25  ;;  %v769_v32 = vsel %vm700_vm1, %v1735_v57, 0.0  ;;  %1051 = vmatpush.msra.mxu3 %v978_v28  ;;  %vm545_vm4 = vcmp.eq.s32.totalorder %v417_v15, 1  ;;  %vm609_vm2 = vcmp.eq.s32.totalorder %v417_v15, 16 }
  0x56   : > { %v944_v33 = vsel %vm476_vm10, %v1700_v41, %v875_v29  ;;  %v838_v35 = vsel %vm636_vm0, %v1727_v52, %v769_v32  ;;  %vm673_vm5 = vcmp.eq.s32.totalorder %v417_v15, 17  ;;  %v449_v47 = vsub.s32 %v1658_v22, %v1706_v43 }
  0x57   : > { %1032 = vmatpush.msra.mxu2 %v944_v33  ;;  %v907_v39 = vsel %vm572_vm15, %v1710_v45, %v838_v35  ;;  %v410_v48 = vsub.s32 %v1690_v37, %v1698_v40  ;;  %v742_v50 = vsel %vm673_vm5, %v1733_v56, 0.0  ;;  %v442_v53 = vsub.s32 %v1693_v38, %v1698_v40 }
  0x58   : > { %v976_v49 = vsel %vm508_vm14, %v1700_v41, %v907_v39  ;;  %v415_v54 = vsub.s32 %v1661_v23, %v1706_v43  ;;  %v811_v55 = vsel %vm609_vm2, %v1725_v51, %v742_v50  ;;  %vm513_vm6 = vcmp.eq.s32.totalorder %v449_v47, 0 }
  0x59   : > { %1052 = vmatpush.msra.mxu3 %v976_v49  ;;  %vm577_vm7 = vcmp.eq.s32.totalorder %v449_v47, 1  ;;  %vm641_vm8 = vcmp.eq.s32.totalorder %v449_v47, 16  ;;  %v880_v22 = vsel %vm545_vm4, %v1708_v44, %v811_v55  ;;  %vm705_vm9 = vcmp.eq.s32.totalorder %v449_v47, 17 }
  0x5a   : > { %vm474_vm10 = vcmp.eq.s32.totalorder %v410_v48, 0  ;;  %vm538_vm11 = vcmp.eq.s32.totalorder %v410_v48, 1  ;;  %v949_v58 = vsel %vm481_vm3, %v1687_v36, %v880_v22  ;;  %v774_v59 = vsel %vm705_vm9, %v1733_v56, 0.0 }
  0x5b   : > { %vm602_vm12 = vcmp.eq.s32.totalorder %v410_v48, 16  ;;  %vm666_vm13 = vcmp.eq.s32.totalorder %v410_v48, 17  ;;  %989 = vmatpush.msra.mxu0 %v949_v58  ;;  %v843_v23 = vsel %vm641_vm8, %v1725_v51, %v774_v59  ;;  %vm506_vm14 = vcmp.eq.s32.totalorder %v442_v53, 0 }
  0x5c   : > { %v735_v60 = vsel %vm666_vm13, %v1735_v57, 0.0  ;;  %vm570_vm15 = vcmp.eq.s32.totalorder %v442_v53, 1  ;;  %v912_v61 = vsel %vm577_vm7, %v1708_v44, %v843_v23  ;;  %vm634_vm0 = vcmp.eq.s32.totalorder %v442_v53, 16 }
  0x5d   : > { %v804_v62 = vsel %vm602_vm12, %v1727_v52, %v735_v60  ;;  %vm698_vm1 = vcmp.eq.s32.totalorder %v442_v53, 17  ;;  %v981_v63 = vsel %vm513_vm6, %v1687_v36, %v912_v61  ;;  %vm479_vm3 = vcmp.eq.s32.totalorder %v415_v54, 0 }
  0x5e   : > { %v873_v0 = vsel %vm538_vm11, %v1710_v45, %v804_v62  ;;  %v767_v1 = vsel %vm698_vm1, %v1735_v57, 0.0  ;;  %1009 = vmatpush.msra.mxu1 %v981_v63  ;;  %vm543_vm4 = vcmp.eq.s32.totalorder %v415_v54, 1  ;;  %vm607_vm2 = vcmp.eq.s32.totalorder %v415_v54, 16 }
  0x5f   : > { %v942_v2 = vsel %vm474_vm10, %v1700_v41, %v873_v0  ;;  %v836_v3 = vsel %vm634_vm0, %v1727_v52, %v767_v1  ;;  %vm671_vm5 = vcmp.eq.s32.totalorder %v415_v54, 17  ;;  %v447_v5 = vsub.s32 %v1665_v26, %v1706_v43 }
  0x60   : > { %1033 = vmatpush.msra.mxu2 %v942_v2  ;;  %v905_v4 = vsel %vm570_vm15, %v1710_v45, %v836_v3  ;;  %v408_v6 = vsub.s32 %v1703_v42, %v1698_v40  ;;  %v740_v8 = vsel %vm671_vm5, %v1733_v56, 0.0  ;;  %v440_v9 = vsub.s32 %v1713_v46, %v1698_v40 }
  0x61   : > { %v974_v7 = vsel %vm506_vm14, %v1700_v41, %v905_v4  ;;  %v413_v10 = vsub.s32 %v1668_v27, %v1706_v43  ;;  %v809_v11 = vsel %vm607_vm2, %v1725_v51, %v740_v8  ;;  %vm511_vm6 = vcmp.eq.s32.totalorder %v447_v5, 0 }
  0x62   : > { %1053 = vmatpush.msra.mxu3 %v974_v7  ;;  %vm575_vm7 = vcmp.eq.s32.totalorder %v447_v5, 1  ;;  %vm639_vm8 = vcmp.eq.s32.totalorder %v447_v5, 16  ;;  %v878_v26 = vsel %vm543_vm4, %v1708_v44, %v809_v11  ;;  %vm703_vm9 = vcmp.eq.s32.totalorder %v447_v5, 17 }
  0x63   : > { %vm472_vm10 = vcmp.eq.s32.totalorder %v408_v6, 0  ;;  %vm536_vm11 = vcmp.eq.s32.totalorder %v408_v6, 1  ;;  %v947_v12 = vsel %vm479_vm3, %v1687_v36, %v878_v26  ;;  %v772_v13 = vsel %vm703_vm9, %v1733_v56, 0.0 }
  0x64   : > { %vm600_vm12 = vcmp.eq.s32.totalorder %v408_v6, 16  ;;  %vm664_vm13 = vcmp.eq.s32.totalorder %v408_v6, 17  ;;  %990 = vmatpush.msra.mxu0 %v947_v12  ;;  %v841_v27 = vsel %vm639_vm8, %v1725_v51, %v772_v13  ;;  %vm504_vm14 = vcmp.eq.s32.totalorder %v440_v9, 0 }
  0x65   : > { %v733_v15 = vsel %vm664_vm13, %v1735_v57, 0.0  ;;  %vm568_vm15 = vcmp.eq.s32.totalorder %v440_v9, 1  ;;  %v910_v16 = vsel %vm575_vm7, %v1708_v44, %v841_v27  ;;  %vm632_vm0 = vcmp.eq.s32.totalorder %v440_v9, 16 }
  0x66   : > { %v802_v17 = vsel %vm600_vm12, %v1727_v52, %v733_v15  ;;  %vm696_vm1 = vcmp.eq.s32.totalorder %v440_v9, 17  ;;  %v979_v18 = vsel %vm511_vm6, %v1687_v36, %v910_v16  ;;  %vm477_vm3 = vcmp.eq.s32.totalorder %v413_v10, 0 }
  0x67   : > { %v871_v19 = vsel %vm536_vm11, %v1710_v45, %v802_v17  ;;  %v765_v20 = vsel %vm696_vm1, %v1735_v57, 0.0  ;;  %1010 = vmatpush.msra.mxu1 %v979_v18  ;;  %vm541_vm4 = vcmp.eq.s32.totalorder %v413_v10, 1  ;;  %vm605_vm2 = vcmp.eq.s32.totalorder %v413_v10, 16 }
  0x68   : > { %v940_v21 = vsel %vm472_vm10, %v1700_v41, %v871_v19  ;;  %v834_v24 = vsel %vm632_vm0, %v1727_v52, %v765_v20  ;;  %vm669_vm5 = vcmp.eq.s32.totalorder %v413_v10, 17  ;;  %v445_v28 = vsub.s32 %v1675_v30, %v1706_v43 }
  0x69   : > { %1034 = vmatpush.msra.mxu2 %v940_v21  ;;  %v903_v25 = vsel %vm568_vm15, %v1710_v45, %v834_v24  ;;  %v1847_v29 = vadd.s32 72, %v1645_v14  ;;  %v738_v33 = vsel %vm669_vm5, %v1733_v56, 0.0  ;;  %v1853_v35 = vadd.s32 200, %v1645_v14 }
  0x6a   : > { %v972_v32 = vsel %vm504_vm14, %v1700_v41, %v903_v25  ;;  %v411_v39 = vsub.s32 %v1678_v31, %v1706_v43  ;;  %v807_v47 = vsel %vm605_vm2, %v1725_v51, %v738_v33  ;;  %vm509_vm6 = vcmp.eq.s32.totalorder %v445_v28, 0 }
  0x6b   : > { %1054 = vmatpush.msra.mxu3 %v972_v32  ;;  %vm573_vm7 = vcmp.eq.s32.totalorder %v445_v28, 1  ;;  %vm637_vm8 = vcmp.eq.s32.totalorder %v445_v28, 16  ;;  %v876_v30 = vsel %vm541_vm4, %v1708_v44, %v807_v47  ;;  %vm701_vm9 = vcmp.eq.s32.totalorder %v445_v28, 17 }
  0x6c   : > { %v406_v48 = vsub.s32 %v1847_v29, %v1698_v40  ;;  %v438_v49 = vsub.s32 %v1853_v35, %v1698_v40  ;;  %v945_v50 = vsel %vm477_vm3, %v1687_v36, %v876_v30  ;;  %v770_v31 = vsel %vm701_vm9, %v1733_v56, 0.0 }
  0x6d   : > { %vm475_vm10 = vcmp.eq.s32.totalorder %v411_v39, 0  ;;  %vm539_vm11 = vcmp.eq.s32.totalorder %v411_v39, 1  ;;  %991 = vmatpush.msra.mxu0 %v945_v50  ;;  %v839_v53 = vsel %vm637_vm8, %v1725_v51, %v770_v31  ;;  %vm603_vm2 = vcmp.eq.s32.totalorder %v411_v39, 16 }
  0x6e   : > { %vm470_vm12 = vcmp.eq.s32.totalorder %v406_v48, 0  ;;  %vm534_vm13 = vcmp.eq.s32.totalorder %v406_v48, 1  ;;  %vm598_vm14 = vcmp.eq.s32.totalorder %v406_v48, 16  ;;  %v908_v54 = vsel %vm573_vm7, %v1708_v44, %v839_v53 }
  0x6f   : > { %vm662_vm15 = vcmp.eq.s32.totalorder %v406_v48, 17  ;;  %vm502_vm0 = vcmp.eq.s32.totalorder %v438_v49, 0  ;;  %vm566_vm1 = vcmp.eq.s32.totalorder %v438_v49, 1  ;;  %v977_v55 = vsel %vm509_vm6, %v1687_v36, %v908_v54 }
  0x70   : > { %v731_v22 = vsel %vm662_vm15, %v1735_v57, 0.0  ;;  %vm630_vm3 = vcmp.eq.s32.totalorder %v438_v49, 16  ;;  %vm694_vm4 = vcmp.eq.s32.totalorder %v438_v49, 17  ;;  %1011 = vmatpush.msra.mxu1 %v977_v55  ;;  %vm667_vm5 = vcmp.eq.s32.totalorder %v411_v39, 17 }
  0x71   : > { %v800_v58 = vsel %vm598_vm14, %v1727_v52, %v731_v22  ;;  %v763_v59 = vsel %vm694_vm4, %v1735_v57, 0.0  ;;  %v736_v61 = vsel %vm667_vm5, %v1733_v56, 0.0  ;;  %v443_v62 = vsub.s32 %v1684_v34, %v1706_v43 }
  0x72   : > { %v869_v23 = vsel %vm534_vm13, %v1710_v45, %v800_v58  ;;  %v832_v60 = vsel %vm630_vm3, %v1727_v52, %v763_v59  ;;  %v805_v1 = vsel %vm603_vm2, %v1725_v51, %v736_v61  ;;  %v1884_v2 = vadd.s32 64, %v1645_v14 }
  0x73   : > { %v938_v63 = vsel %vm470_vm12, %v1700_v41, %v869_v23  ;;  %v901_v0 = vsel %vm566_vm1, %v1710_v45, %v832_v60  ;;  %v874_v4 = vsel %vm539_vm11, %v1708_v44, %v805_v1  ;;  %vm507_vm6 = vcmp.eq.s32.totalorder %v443_v62, 0 }
  0x74   : > { %1035 = vmatpush.msra.mxu2 %v938_v63  ;;  %v970_v3 = vsel %vm502_vm0, %v1700_v41, %v901_v0  ;;  %vm571_vm7 = vcmp.eq.s32.totalorder %v443_v62, 1  ;;  %v943_v34 = vsel %vm475_vm10, %v1687_v36, %v874_v4  ;;  %vm635_vm8 = vcmp.eq.s32.totalorder %v443_v62, 16 }
  0x75   : > { %1055 = vmatpush.msra.mxu3 %v970_v3  ;;  %vm699_vm9 = vcmp.eq.s32.totalorder %v443_v62, 17  ;;  %v404_v5 = vsub.s32 %v1884_v2, %v1698_v40  ;;  %992 = vmatpush.msra.mxu0 %v943_v34  ;;  %v1896_v7 = vadd.s32 192, %v1645_v14  ;;  %v409_v8 = vsub.s32 %v1690_v37, %v1706_v43 }
  0x76   : > { %v768_v6 = vsel %vm699_vm9, %v1733_v56, 0.0  ;;  %v441_v9 = vsub.s32 %v1693_v38, %v1706_v43  ;;  %v1923_v24 = vadd.s32 56, %v1645_v14  ;;  %v1931_v33 = vadd.s32 184, %v1645_v14 }
  0x77   : > { %v837_v10 = vsel %vm635_vm8, %v1725_v51, %v768_v6  ;;  %vm468_vm10 = vcmp.eq.s32.totalorder %v404_v5, 0  ;;  %vm532_vm11 = vcmp.eq.s32.totalorder %v404_v5, 1  ;;  %vm596_vm12 = vcmp.eq.s32.totalorder %v404_v5, 16 }
  0x78   : > { %v906_v11 = vsel %vm571_vm7, %v1708_v44, %v837_v10  ;;  %vm660_vm13 = vcmp.eq.s32.totalorder %v404_v5, 17  ;;  %v436_v26 = vsub.s32 %v1896_v7, %v1698_v40  ;;  %vm473_vm14 = vcmp.eq.s32.totalorder %v409_v8, 0 }
  0x79   : > { %v975_v12 = vsel %vm507_vm6, %v1687_v36, %v906_v11  ;;  %v729_v37 = vsel %vm660_vm13, %v1735_v57, 0.0  ;;  %vm537_vm15 = vcmp.eq.s32.totalorder %v409_v8, 1  ;;  %vm601_vm0 = vcmp.eq.s32.totalorder %v409_v8, 16 }
  0x7a   : > { %1012 = vmatpush.msra.mxu1 %v975_v12  ;;  %v798_v38 = vsel %vm596_vm12, %v1727_v52, %v729_v37  ;;  %vm500_vm1 = vcmp.eq.s32.totalorder %v436_v26, 0  ;;  %vm564_vm3 = vcmp.eq.s32.totalorder %v436_v26, 1  ;;  %vm628_vm4 = vcmp.eq.s32.totalorder %v436_v26, 16 }
  0x7b   : > { %v867_v13 = vsel %vm532_vm11, %v1710_v45, %v798_v38  ;;  %vm692_vm2 = vcmp.eq.s32.totalorder %v436_v26, 17  ;;  %vm665_vm5 = vcmp.eq.s32.totalorder %v409_v8, 17  ;;  %vm505_vm7 = vcmp.eq.s32.totalorder %v441_v9, 0 }
  0x7c   : > { %v936_v27 = vsel %vm468_vm10, %v1700_v41, %v867_v13  ;;  %v761_v15 = vsel %vm692_vm2, %v1735_v57, 0.0  ;;  %v734_v16 = vsel %vm665_vm5, %v1733_v56, 0.0  ;;  %vm569_vm6 = vcmp.eq.s32.totalorder %v441_v9, 1 }
  0x7d   : > { %1036 = vmatpush.msra.mxu2 %v936_v27  ;;  %v830_v17 = vsel %vm628_vm4, %v1727_v52, %v761_v15  ;;  %v803_v18 = vsel %vm601_vm0, %v1725_v51, %v734_v16  ;;  %vm633_vm8 = vcmp.eq.s32.totalorder %v441_v9, 16  ;;  %vm697_vm9 = vcmp.eq.s32.totalorder %v441_v9, 17 }
  0x7e   : > { %v899_v19 = vsel %vm564_vm3, %v1710_v45, %v830_v17  ;;  %v872_v20 = vsel %vm537_vm15, %v1708_v44, %v803_v18  ;;  %v766_v21 = vsel %vm697_vm9, %v1733_v56, 0.0  ;;  %v402_v47 = vsub.s32 %v1923_v24, %v1698_v40 }
  0x7f   : > { %v968_v25 = vsel %vm500_vm1, %v1700_v41, %v899_v19  ;;  %v941_v28 = vsel %vm473_vm14, %v1687_v36, %v872_v20  ;;  %v835_v32 = vsel %vm633_vm8, %v1725_v51, %v766_v21  ;;  %v407_v30 = vsub.s32 %v1703_v42, %v1706_v43 }
  0x80   : > { %1056 = vmatpush.msra.mxu3 %v968_v25  ;;  %993 = vmatpush.msra.mxu0 %v941_v28  ;;  %v904_v39 = vsel %vm569_vm6, %v1708_v44, %v835_v32  ;;  %v1940_v48 = vadd.s32 48, %v1645_v14  ;;  %v434_v50 = vsub.s32 %v1931_v33, %v1698_v40  ;;  %v439_v31 = vsub.s32 %v1713_v46, %v1706_v43 }
  0x81   : > { %v973_v49 = vsel %vm505_vm7, %v1687_v36, %v904_v39  ;;  %v1949_v53 = vadd.s32 176, %v1645_v14  ;;  %vm466_vm10 = vcmp.eq.s32.totalorder %v402_v47, 0  ;;  %vm530_vm11 = vcmp.eq.s32.totalorder %v402_v47, 1 }
  0x82   : > { %1013 = vmatpush.msra.mxu1 %v973_v49  ;;  %vm594_vm12 = vcmp.eq.s32.totalorder %v402_v47, 16  ;;  %vm658_vm13 = vcmp.eq.s32.totalorder %v402_v47, 17  ;;  %vm498_vm14 = vcmp.eq.s32.totalorder %v434_v50, 0  ;;  %vm562_vm15 = vcmp.eq.s32.totalorder %v434_v50, 1 }
  0x83   : > { %v727_v42 = vsel %vm658_vm13, %v1735_v57, 0.0  ;;  %vm626_vm0 = vcmp.eq.s32.totalorder %v434_v50, 16  ;;  %vm690_vm1 = vcmp.eq.s32.totalorder %v434_v50, 17  ;;  %vm471_vm3 = vcmp.eq.s32.totalorder %v407_v30, 0 }
  0x84   : > { %v796_v54 = vsel %vm594_vm12, %v1727_v52, %v727_v42  ;;  %vm535_vm4 = vcmp.eq.s32.totalorder %v407_v30, 1  ;;  %v759_v55 = vsel %vm690_vm1, %v1735_v57, 0.0  ;;  %vm599_vm2 = vcmp.eq.s32.totalorder %v407_v30, 16 }
  0x85   : > { %v865_v46 = vsel %vm530_vm11, %v1710_v45, %v796_v54  ;;  %vm663_vm5 = vcmp.eq.s32.totalorder %v407_v30, 17  ;;  %v828_v58 = vsel %vm626_vm0, %v1727_v52, %v759_v55  ;;  %vm503_vm7 = vcmp.eq.s32.totalorder %v439_v31, 0 }
  0x86   : > { %v934_v22 = vsel %vm466_vm10, %v1700_v41, %v865_v46  ;;  %v732_v59 = vsel %vm663_vm5, %v1733_v56, 0.0  ;;  %v897_v23 = vsel %vm562_vm15, %v1710_v45, %v828_v58  ;;  %vm567_vm6 = vcmp.eq.s32.totalorder %v439_v31, 1 }
  0x87   : > { %1037 = vmatpush.msra.mxu2 %v934_v22  ;;  %v801_v60 = vsel %vm599_vm2, %v1725_v51, %v732_v59  ;;  %vm631_vm8 = vcmp.eq.s32.totalorder %v439_v31, 16  ;;  %v966_v61 = vsel %vm498_vm14, %v1700_v41, %v897_v23  ;;  %vm695_vm9 = vcmp.eq.s32.totalorder %v439_v31, 17 }
  0x88   : > { %v870_v62 = vsel %vm535_vm4, %v1708_v44, %v801_v60  ;;  %v400_v63 = vsub.s32 %v1940_v48, %v1698_v40  ;;  %1057 = vmatpush.msra.mxu3 %v966_v61  ;;  %v764_v1 = vsel %vm695_vm9, %v1733_v56, 0.0  ;;  %v432_v3 = vsub.s32 %v1949_v53, %v1698_v40 }
  0x89   : > { %v939_v0 = vsel %vm471_vm3, %v1687_v36, %v870_v62  ;;  %v405_v4 = vsub.s32 %v1847_v29, %v1706_v43  ;;  %v833_v34 = vsel %vm631_vm8, %v1725_v51, %v764_v1  ;;  %v437_v38 = vsub.s32 %v1853_v35, %v1706_v43 }
  0x8a   : > { %994 = vmatpush.msra.mxu0 %v939_v0  ;;  %vm464_vm10 = vcmp.eq.s32.totalorder %v400_v63, 0  ;;  %vm528_vm11 = vcmp.eq.s32.totalorder %v400_v63, 1  ;;  %vm592_vm12 = vcmp.eq.s32.totalorder %v400_v63, 16  ;;  %v902_v5 = vsel %vm567_vm6, %v1708_v44, %v833_v34 }
  0x8b   : > { %vm656_vm13 = vcmp.eq.s32.totalorder %v400_v63, 17  ;;  %vm496_vm14 = vcmp.eq.s32.totalorder %v432_v3, 0  ;;  %vm560_vm15 = vcmp.eq.s32.totalorder %v432_v3, 1  ;;  %v971_v6 = vsel %vm503_vm7, %v1687_v36, %v902_v5 }
  0x8c   : > { %v725_v8 = vsel %vm656_vm13, %v1735_v57, 0.0  ;;  %vm624_vm0 = vcmp.eq.s32.totalorder %v432_v3, 16  ;;  %vm688_vm1 = vcmp.eq.s32.totalorder %v432_v3, 17  ;;  %1014 = vmatpush.msra.mxu1 %v971_v6  ;;  %vm469_vm3 = vcmp.eq.s32.totalorder %v405_v4, 0 }
  0x8d   : > { %v794_v29 = vsel %vm592_vm12, %v1727_v52, %v725_v8  ;;  %v757_v9 = vsel %vm688_vm1, %v1735_v57, 0.0  ;;  %vm533_vm4 = vcmp.eq.s32.totalorder %v405_v4, 1  ;;  %vm597_vm2 = vcmp.eq.s32.totalorder %v405_v4, 16 }
  0x8e   : > { %v863_v10 = vsel %vm528_vm11, %v1710_v45, %v794_v29  ;;  %v826_v11 = vsel %vm624_vm0, %v1727_v52, %v757_v9  ;;  %vm661_vm5 = vcmp.eq.s32.totalorder %v405_v4, 17  ;;  %v1993_v15 = vadd.s32 40, %v1645_v14 }
  0x8f   : > { %v932_v26 = vsel %vm464_vm10, %v1700_v41, %v863_v10  ;;  %v895_v12 = vsel %vm560_vm15, %v1710_v45, %v826_v11  ;;  %v730_v37 = vsel %vm661_vm5, %v1733_v56, 0.0  ;;  %v1996_v16 = vadd.s32 168, %v1645_v14 }
  0x90   : > { %1038 = vmatpush.msra.mxu2 %v932_v26  ;;  %v964_v13 = vsel %vm496_vm14, %v1700_v41, %v895_v12  ;;  %v799_v27 = vsel %vm597_vm2, %v1725_v51, %v730_v37  ;;  %vm501_vm7 = vcmp.eq.s32.totalorder %v437_v38, 0  ;;  %vm565_vm6 = vcmp.eq.s32.totalorder %v437_v38, 1 }
  0x91   : > { %1058 = vmatpush.msra.mxu3 %v964_v13  ;;  %v868_v17 = vsel %vm533_vm4, %v1708_v44, %v799_v27  ;;  %vm629_vm8 = vcmp.eq.s32.totalorder %v437_v38, 16  ;;  %vm693_vm9 = vcmp.eq.s32.totalorder %v437_v38, 17  ;;  %v398_v18 = vsub.s32 %v1993_v15, %v1698_v40 }
  0x92   : > { %v937_v35 = vsel %vm469_vm3, %v1687_v36, %v868_v17  ;;  %v430_v19 = vsub.s32 %v1996_v16, %v1698_v40  ;;  %v762_v20 = vsel %vm693_vm9, %v1733_v56, 0.0  ;;  %v403_v21 = vsub.s32 %v1884_v2, %v1706_v43 }
  0x93   : > { %995 = vmatpush.msra.mxu0 %v937_v35  ;;  %v435_v25 = vsub.s32 %v1896_v7, %v1706_v43  ;;  %v2011_v28 = vadd.s32 32, %v1645_v14  ;;  %v831_v32 = vsel %vm629_vm8, %v1725_v51, %v762_v20  ;;  %vm462_vm10 = vcmp.eq.s32.totalorder %v398_v18, 0 }
  0x94   : > { %vm526_vm11 = vcmp.eq.s32.totalorder %v398_v18, 1  ;;  %vm590_vm12 = vcmp.eq.s32.totalorder %v398_v18, 16  ;;  %v900_v39 = vsel %vm565_vm6, %v1708_v44, %v831_v32  ;;  %vm654_vm13 = vcmp.eq.s32.totalorder %v398_v18, 17 }
  0x95   : > { %vm494_vm14 = vcmp.eq.s32.totalorder %v430_v19, 0  ;;  %vm558_vm15 = vcmp.eq.s32.totalorder %v430_v19, 1  ;;  %v969_v47 = vsel %vm501_vm7, %v1687_v36, %v900_v39  ;;  %v723_v2 = vsel %vm654_vm13, %v1735_v57, 0.0 }
  0x96   : > { %vm622_vm0 = vcmp.eq.s32.totalorder %v430_v19, 16  ;;  %vm686_vm1 = vcmp.eq.s32.totalorder %v430_v19, 17  ;;  %1015 = vmatpush.msra.mxu1 %v969_v47  ;;  %v792_v7 = vsel %vm590_vm12, %v1727_v52, %v723_v2  ;;  %vm467_vm3 = vcmp.eq.s32.totalorder %v403_v21, 0 }
  0x97   : > { %v755_v30 = vsel %vm686_vm1, %v1735_v57, 0.0  ;;  %vm531_vm4 = vcmp.eq.s32.totalorder %v403_v21, 1  ;;  %v861_v49 = vsel %vm526_vm11, %v1710_v45, %v792_v7  ;;  %vm595_vm2 = vcmp.eq.s32.totalorder %v403_v21, 16 }
  0x98   : > { %v824_v50 = vsel %vm622_vm0, %v1727_v52, %v755_v30  ;;  %vm659_vm5 = vcmp.eq.s32.totalorder %v403_v21, 17  ;;  %v930_v31 = vsel %vm462_vm10, %v1700_v41, %v861_v49  ;;  %vm499_vm7 = vcmp.eq.s32.totalorder %v435_v25, 0 }
  0x99   : > { %v893_v42 = vsel %vm558_vm15, %v1710_v45, %v824_v50  ;;  %v728_v54 = vsel %vm659_vm5, %v1733_v56, 0.0  ;;  %1039 = vmatpush.msra.mxu2 %v930_v31  ;;  %vm563_vm6 = vcmp.eq.s32.totalorder %v435_v25, 1  ;;  %vm627_vm8 = vcmp.eq.s32.totalorder %v435_v25, 16 }
  0x9a   : > { %v962_v46 = vsel %vm494_vm14, %v1700_v41, %v893_v42  ;;  %v797_v55 = vsel %vm595_vm2, %v1725_v51, %v728_v54  ;;  %vm691_vm9 = vcmp.eq.s32.totalorder %v435_v25, 17  ;;  %v396_v58 = vsub.s32 %v2011_v28, %v1698_v40 }
  0x9b   : > { %1059 = vmatpush.msra.mxu3 %v962_v46  ;;  %v866_v22 = vsel %vm531_vm4, %v1708_v44, %v797_v55  ;;  %v2033_v59 = vadd.s32 160, %v1645_v14  ;;  %v760_v60 = vsel %vm691_vm9, %v1733_v56, 0.0  ;;  %v401_v61 = vsub.s32 %v1923_v24, %v1706_v43 }
  0x9c   : > { %v935_v23 = vsel %vm467_vm3, %v1687_v36, %v866_v22  ;;  %v433_v62 = vsub.s32 %v1931_v33, %v1706_v43  ;;  %v829_v63 = vsel %vm627_vm8, %v1725_v51, %v760_v60  ;;  %vm460_vm10 = vcmp.eq.s32.totalorder %v396_v58, 0 }
  0x9d   : > { %996 = vmatpush.msra.mxu0 %v935_v23  ;;  %vm524_vm11 = vcmp.eq.s32.totalorder %v396_v58, 1  ;;  %vm588_vm12 = vcmp.eq.s32.totalorder %v396_v58, 16  ;;  %v898_v0 = vsel %vm563_vm6, %v1708_v44, %v829_v63  ;;  %vm652_vm13 = vcmp.eq.s32.totalorder %v396_v58, 17 }
  0x9e   : > { %v428_v1 = vsub.s32 %v2033_v59, %v1698_v40  ;;  %vm465_vm14 = vcmp.eq.s32.totalorder %v401_v61, 0  ;;  %v967_v24 = vsel %vm499_vm7, %v1687_v36, %v898_v0  ;;  %v721_v3 = vsel %vm652_vm13, %v1735_v57, 0.0 }
  0x9f   : > { %vm529_vm15 = vcmp.eq.s32.totalorder %v401_v61, 1  ;;  %vm593_vm0 = vcmp.eq.s32.totalorder %v401_v61, 16  ;;  %1016 = vmatpush.msra.mxu1 %v967_v24  ;;  %v790_v33 = vsel %vm588_vm12, %v1727_v52, %v721_v3  ;;  %vm657_vm5 = vcmp.eq.s32.totalorder %v401_v61, 17 }
  0xa0   : > { %vm492_vm1 = vcmp.eq.s32.totalorder %v428_v1, 0  ;;  %vm556_vm3 = vcmp.eq.s32.totalorder %v428_v1, 1  ;;  %vm620_vm4 = vcmp.eq.s32.totalorder %v428_v1, 16  ;;  %v859_v4 = vsel %vm524_vm11, %v1710_v45, %v790_v33 }
  0xa1   : > { %vm684_vm2 = vcmp.eq.s32.totalorder %v428_v1, 17  ;;  %vm497_vm6 = vcmp.eq.s32.totalorder %v433_v62, 0  ;;  %v928_v34 = vsel %vm460_vm10, %v1700_v41, %v859_v4  ;;  %v726_v6 = vsel %vm657_vm5, %v1733_v56, 0.0 }
  0xa2   : > { %v753_v5 = vsel %vm684_vm2, %v1735_v57, 0.0  ;;  %vm561_vm7 = vcmp.eq.s32.totalorder %v433_v62, 1  ;;  %1040 = vmatpush.msra.mxu2 %v928_v34  ;;  %v795_v29 = vsel %vm593_vm0, %v1725_v51, %v726_v6  ;;  %vm625_vm8 = vcmp.eq.s32.totalorder %v433_v62, 16 }
  0xa3   : > { %v822_v8 = vsel %vm620_vm4, %v1727_v52, %v753_v5  ;;  %vm689_vm9 = vcmp.eq.s32.totalorder %v433_v62, 17  ;;  %v864_v10 = vsel %vm529_vm15, %v1708_v44, %v795_v29  ;;  %v2064_v26 = vadd.s32 24, %v1645_v14 }
  0xa4   : > { %v891_v9 = vsel %vm556_vm3, %v1710_v45, %v822_v8  ;;  %v758_v11 = vsel %vm689_vm9, %v1733_v56, 0.0  ;;  %v933_v37 = vsel %vm465_vm14, %v1687_v36, %v864_v10  ;;  %v2072_v13 = vadd.s32 152, %v1645_v14 }
  0xa5   : > { %v960_v12 = vsel %vm492_vm1, %v1700_v41, %v891_v9  ;;  %v827_v38 = vsel %vm625_vm8, %v1725_v51, %v758_v11  ;;  %997 = vmatpush.msra.mxu0 %v933_v37  ;;  %v394_v17 = vsub.s32 %v2064_v26, %v1698_v40  ;;  %v399_v35 = vsub.s32 %v1940_v48, %v1706_v43 }
  0xa6   : > { %1060 = vmatpush.msra.mxu3 %v960_v12  ;;  %v896_v27 = vsel %vm561_vm7, %v1708_v44, %v827_v38  ;;  %v2081_v18 = vadd.s32 16, %v1645_v14  ;;  %v426_v20 = vsub.s32 %v2072_v13, %v1698_v40  ;;  %v431_v21 = vsub.s32 %v1949_v53, %v1706_v43 }
  0xa7   : > { %v965_v19 = vsel %vm497_vm6, %v1687_v36, %v896_v27  ;;  %v2090_v25 = vadd.s32 144, %v1645_v14  ;;  %vm458_vm10 = vcmp.eq.s32.totalorder %v394_v17, 0  ;;  %vm522_vm11 = vcmp.eq.s32.totalorder %v394_v17, 1 }
  0xa8   : > { %1017 = vmatpush.msra.mxu1 %v965_v19  ;;  %vm586_vm12 = vcmp.eq.s32.totalorder %v394_v17, 16  ;;  %vm650_vm13 = vcmp.eq.s32.totalorder %v394_v17, 17  ;;  %vm490_vm14 = vcmp.eq.s32.totalorder %v426_v20, 0  ;;  %vm554_vm15 = vcmp.eq.s32.totalorder %v426_v20, 1 }
  0xa9   : > { %v719_v48 = vsel %vm650_vm13, %v1735_v57, 0.0  ;;  %vm618_vm0 = vcmp.eq.s32.totalorder %v426_v20, 16  ;;  %vm682_vm1 = vcmp.eq.s32.totalorder %v426_v20, 17  ;;  %vm463_vm3 = vcmp.eq.s32.totalorder %v399_v35, 0 }
  0xaa   : > { %v788_v32 = vsel %vm586_vm12, %v1727_v52, %v719_v48  ;;  %vm527_vm4 = vcmp.eq.s32.totalorder %v399_v35, 1  ;;  %v751_v39 = vsel %vm682_vm1, %v1735_v57, 0.0  ;;  %vm591_vm2 = vcmp.eq.s32.totalorder %v399_v35, 16 }
  0xab   : > { %v857_v53 = vsel %vm522_vm11, %v1710_v45, %v788_v32  ;;  %vm655_vm5 = vcmp.eq.s32.totalorder %v399_v35, 17  ;;  %v820_v2 = vsel %vm618_vm0, %v1727_v52, %v751_v39  ;;  %vm495_vm6 = vcmp.eq.s32.totalorder %v431_v21, 0 }
  0xac   : > { %v926_v47 = vsel %vm458_vm10, %v1700_v41, %v857_v53  ;;  %v724_v7 = vsel %vm655_vm5, %v1733_v56, 0.0  ;;  %v889_v30 = vsel %vm554_vm15, %v1710_v45, %v820_v2  ;;  %vm559_vm7 = vcmp.eq.s32.totalorder %v431_v21, 1 }
  0xad   : > { %1041 = vmatpush.msra.mxu2 %v926_v47  ;;  %v793_v49 = vsel %vm591_vm2, %v1725_v51, %v724_v7  ;;  %vm623_vm8 = vcmp.eq.s32.totalorder %v431_v21, 16  ;;  %v958_v50 = vsel %vm490_vm14, %v1700_v41, %v889_v30  ;;  %vm687_vm9 = vcmp.eq.s32.totalorder %v431_v21, 17 }
  0xae   : > { %v862_v31 = vsel %vm527_vm4, %v1708_v44, %v793_v49  ;;  %v392_v42 = vsub.s32 %v2081_v18, %v1698_v40  ;;  %1061 = vmatpush.msra.mxu3 %v958_v50  ;;  %v756_v46 = vsel %vm687_vm9, %v1733_v56, 0.0  ;;  %v424_v55 = vsub.s32 %v2090_v25, %v1698_v40 }
  0xaf   : > { %v931_v54 = vsel %vm463_vm3, %v1687_v36, %v862_v31  ;;  %v397_v22 = vsub.s32 %v1993_v15, %v1706_v43  ;;  %v825_v58 = vsel %vm623_vm8, %v1725_v51, %v756_v46  ;;  %v429_v33 = vsub.s32 %v1996_v16, %v1706_v43 }
  0xb0   : > { %998 = vmatpush.msra.mxu0 %v931_v54  ;;  %vm456_vm10 = vcmp.eq.s32.totalorder %v392_v42, 0  ;;  %vm520_vm11 = vcmp.eq.s32.totalorder %v392_v42, 1  ;;  %vm584_vm12 = vcmp.eq.s32.totalorder %v392_v42, 16  ;;  %v894_v23 = vsel %vm559_vm7, %v1708_v44, %v825_v58 }
  0xb1   : > { %vm648_vm13 = vcmp.eq.s32.totalorder %v392_v42, 17  ;;  %vm488_vm14 = vcmp.eq.s32.totalorder %v424_v55, 0  ;;  %vm552_vm15 = vcmp.eq.s32.totalorder %v424_v55, 1  ;;  %v963_v60 = vsel %vm495_vm6, %v1687_v36, %v894_v23 }
  0xb2   : > { %v717_v61 = vsel %vm648_vm13, %v1735_v57, 0.0  ;;  %vm616_vm0 = vcmp.eq.s32.totalorder %v424_v55, 16  ;;  %vm680_vm1 = vcmp.eq.s32.totalorder %v424_v55, 17  ;;  %1018 = vmatpush.msra.mxu1 %v963_v60  ;;  %vm461_vm3 = vcmp.eq.s32.totalorder %v397_v22, 0 }
  0xb3   : > { %v786_v15 = vsel %vm584_vm12, %v1727_v52, %v717_v61  ;;  %v749_v62 = vsel %vm680_vm1, %v1735_v57, 0.0  ;;  %vm525_vm4 = vcmp.eq.s32.totalorder %v397_v22, 1  ;;  %vm589_vm2 = vcmp.eq.s32.totalorder %v397_v22, 16 }
  0xb4   : > { %v855_v63 = vsel %vm520_vm11, %v1710_v45, %v786_v15  ;;  %v818_v0 = vsel %vm616_vm0, %v1727_v52, %v749_v62  ;;  %vm653_vm5 = vcmp.eq.s32.totalorder %v397_v22, 17  ;;  %v2134_v5 = vadd.s32 8, %v1645_v14  ;;  %v2202_v62 = vld.sshfl [vmem:[#allocation1 + $0x8] sm:$0xff pattern:$0x75316420] }
  0xb5   : > { %v924_v1 = vsel %vm456_vm10, %v1700_v41, %v855_v63  ;;  %v887_v24 = vsel %vm552_vm15, %v1710_v45, %v818_v0  ;;  %v722_v3 = vsel %vm653_vm5, %v1733_v56, 0.0  ;;  %v2137_v6 = vadd.s32 136, %v1645_v14 }
  0xb6   : > { %1042 = vmatpush.msra.mxu2 %v924_v1  ;;  %v956_v4 = vsel %vm488_vm14, %v1700_v41, %v887_v24  ;;  %v791_v34 = vsel %vm589_vm2, %v1725_v51, %v722_v3  ;;  %vm493_vm6 = vcmp.eq.s32.totalorder %v429_v33, 0  ;;  %vm557_vm7 = vcmp.eq.s32.totalorder %v429_v33, 1 }
  0xb7   : > { %1062 = vmatpush.msra.mxu3 %v956_v4  ;;  %v860_v8 = vsel %vm525_vm4, %v1708_v44, %v791_v34  ;;  %vm621_vm8 = vcmp.eq.s32.totalorder %v429_v33, 16  ;;  %vm685_vm9 = vcmp.eq.s32.totalorder %v429_v33, 17  ;;  %v390_v29 = vsub.s32 %v2134_v5, %v1698_v40 }
  0xb8   : > { %v929_v16 = vsel %vm461_vm3, %v1687_v36, %v860_v8  ;;  %v422_v9 = vsub.s32 %v2137_v6, %v1698_v40  ;;  %v754_v10 = vsel %vm685_vm9, %v1733_v56, 0.0  ;;  %v395_v11 = vsub.s32 %v2011_v28, %v1706_v43 }
  0xb9   : > { %999 = vmatpush.msra.mxu0 %v929_v16  ;;  %v427_v12 = vsub.s32 %v2033_v59, %v1706_v43  ;;  %v388_v37 = vsub.s32 %v1645_v14, %v1698_v40  ;;  %v823_v38 = vsel %vm621_vm8, %v1725_v51, %v754_v10  ;;  %vm454_vm10 = vcmp.eq.s32.totalorder %v390_v29, 0 }
  0xba   : > { %vm518_vm11 = vcmp.eq.s32.totalorder %v390_v29, 1  ;;  %vm582_vm12 = vcmp.eq.s32.totalorder %v390_v29, 16  ;;  %v892_v27 = vsel %vm557_vm7, %v1708_v44, %v823_v38  ;;  %vm646_vm13 = vcmp.eq.s32.totalorder %v390_v29, 17 }
  0xbb   : > { %vm486_vm14 = vcmp.eq.s32.totalorder %v422_v9, 0  ;;  %vm550_vm15 = vcmp.eq.s32.totalorder %v422_v9, 1  ;;  %v961_v17 = vsel %vm493_vm6, %v1687_v36, %v892_v27  ;;  %v715_v28 = vsel %vm646_vm13, %v1735_v57, 0.0 }
  0xbc   : > { %vm614_vm0 = vcmp.eq.s32.totalorder %v422_v9, 16  ;;  %vm678_vm1 = vcmp.eq.s32.totalorder %v422_v9, 17  ;;  %1019 = vmatpush.msra.mxu1 %v961_v17  ;;  %v784_v59 = vsel %vm582_vm12, %v1727_v52, %v715_v28  ;;  %vm459_vm3 = vcmp.eq.s32.totalorder %v395_v11, 0 }
  0xbd   : > { %v747_v35 = vsel %vm678_vm1, %v1735_v57, 0.0  ;;  %vm523_vm4 = vcmp.eq.s32.totalorder %v395_v11, 1  ;;  %v853_v19 = vsel %vm518_vm11, %v1710_v45, %v784_v59  ;;  %vm587_vm2 = vcmp.eq.s32.totalorder %v395_v11, 16 }
  0xbe   : > { %v816_v20 = vsel %vm614_vm0, %v1727_v52, %v747_v35  ;;  %vm651_vm5 = vcmp.eq.s32.totalorder %v395_v11, 17  ;;  %v922_v21 = vsel %vm454_vm10, %v1700_v41, %v853_v19  ;;  %vm491_vm6 = vcmp.eq.s32.totalorder %v427_v12, 0 }
  0xbf   : > { %v885_v48 = vsel %vm550_vm15, %v1710_v45, %v816_v20  ;;  %v720_v32 = vsel %vm651_vm5, %v1733_v56, 0.0  ;;  %1043 = vmatpush.msra.mxu2 %v922_v21  ;;  %vm555_vm7 = vcmp.eq.s32.totalorder %v427_v12, 1  ;;  %vm619_vm8 = vcmp.eq.s32.totalorder %v427_v12, 16 }
  0xc0   : > { %v954_v53 = vsel %vm486_vm14, %v1700_v41, %v885_v48  ;;  %v789_v39 = vsel %vm587_vm2, %v1725_v51, %v720_v32  ;;  %vm683_vm9 = vcmp.eq.s32.totalorder %v427_v12, 17  ;;  %vm452_vm11 = vcmp.eq.s32.totalorder %v388_v37, 0 }
  0xc1   : > { %1063 = vmatpush.msra.mxu3 %v954_v53  ;;  %v858_v47 = vsel %vm523_vm4, %v1708_v44, %v789_v39  ;;  %vm516_vm12 = vcmp.eq.s32.totalorder %v388_v37, 1  ;;  %v752_v7 = vsel %vm683_vm9, %v1733_v56, 0.0  ;;  %vm580_vm10 = vcmp.eq.s32.totalorder %v388_v37, 16 }
  0xc2   : > { %v927_v2 = vsel %vm459_vm3, %v1687_v36, %v858_v47  ;;  %vm644_vm13 = vcmp.eq.s32.totalorder %v388_v37, 17  ;;  %v821_v30 = vsel %vm619_vm8, %v1725_v51, %v752_v7  ;;  %v2176_v50 = vadd.s32 128, %v1645_v14 }
  0xc3   : > { %1000 = vmatpush.msra.mxu0 %v927_v2  ;;  %v713_v49 = vsel %vm644_vm13, %v1735_v57, 0.0  ;;  %v393_v31 = vsub.s32 %v2064_v26, %v1706_v43  ;;  %v890_v42 = vsel %vm555_vm7, %v1708_v44, %v821_v30  ;;  %v425_v46 = vsub.s32 %v2072_v13, %v1706_v43  ;;  %v2192_v26 = vld.sshfl [vmem:[#allocation1] sm:$0xff pattern:$0x75316420] }
  0xc4   : > { %v782_v54 = vsel %vm580_vm10, %v1727_v52, %v713_v49  ;;  %v391_v55 = vsub.s32 %v2081_v18, %v1706_v43  ;;  %v959_v22 = vsel %vm491_vm6, %v1687_v36, %v890_v42  ;;  %v420_v23 = vsub.s32 %v2176_v50, %v1698_v40 }
  0xc5   : > { %v851_v58 = vsel %vm516_vm12, %v1710_v45, %v782_v54  ;;  %vm457_vm14 = vcmp.eq.s32.totalorder %v393_v31, 0  ;;  %1020 = vmatpush.msra.mxu1 %v959_v22  ;;  %vm521_vm15 = vcmp.eq.s32.totalorder %v393_v31, 1  ;;  %vm585_vm0 = vcmp.eq.s32.totalorder %v393_v31, 16 }
  0xc6   : > { %v920_v60 = vsel %vm452_vm11, %v1700_v41, %v851_v58  ;;  %vm649_vm1 = vcmp.eq.s32.totalorder %v393_v31, 17  ;;  %vm484_vm3 = vcmp.eq.s32.totalorder %v420_v23, 0  ;;  %vm548_vm4 = vcmp.eq.s32.totalorder %v420_v23, 1 }
  0xc7   : > { %1044 = vmatpush.msra.mxu2 %v920_v60  ;;  %vm612_vm2 = vcmp.eq.s32.totalorder %v420_v23, 16  ;;  %vm676_vm5 = vcmp.eq.s32.totalorder %v420_v23, 17  ;;  %v718_v40 = vsel %vm649_vm1, %v1733_v56, 0.0  ;;  %vm489_vm6 = vcmp.eq.s32.totalorder %v425_v46, 0 }
  0xc8   : > { %v745_v13 = vsel %vm676_vm5, %v1735_v57, 0.0  ;;  %1045 = vmatmul.f32.vlgmr.msra.gmra.mxu2 %v2192_v26  ;;  %vm553_vm7 = vcmp.eq.s32.totalorder %v425_v46, 1  ;;  %v787_v61 = vsel %vm585_vm0, %v1725_v51, %v718_v40  ;;  %vm617_vm8 = vcmp.eq.s32.totalorder %v425_v46, 16 }
  0xc9   : > { %v814_v18 = vsel %vm612_vm2, %v1727_v52, %v745_v13  ;;  %vm681_vm9 = vcmp.eq.s32.totalorder %v425_v46, 17  ;;  %v856_v63 = vsel %vm521_vm15, %v1708_v44, %v787_v61  ;;  %vm455_vm11 = vcmp.eq.s32.totalorder %v391_v55, 0 }
  0xca   : > { %v883_v15 = vsel %vm548_vm4, %v1710_v45, %v814_v18  ;;  %v750_v57 = vsel %vm681_vm9, %v1733_v56, 0.0  ;;  %v925_v52 = vsel %vm457_vm14, %v1687_v36, %v856_v63  ;;  %vm519_vm12 = vcmp.eq.s32.totalorder %v391_v55, 1 }
  0xcb   : > { %v952_v0 = vsel %vm484_vm3, %v1700_v41, %v883_v15  ;;  %v819_v1 = vsel %vm617_vm8, %v1725_v51, %v750_v57  ;;  %1001 = vmatpush.msra.mxu0 %v925_v52  ;;  %vm583_vm10 = vcmp.eq.s32.totalorder %v391_v55, 16  ;;  %vm647_vm13 = vcmp.eq.s32.totalorder %v391_v55, 17 }
  0xcc   : > { %1064 = vmatpush.msra.mxu3 %v952_v0  ;;  %v888_v45 = vsel %vm553_vm7, %v1708_v44, %v819_v1  ;;  %v423_v24 = vsub.s32 %v2090_v25, %v1706_v43  ;;  %v716_v3 = vsel %vm647_vm13, %v1733_v56, 0.0  ;;  %v389_v33 = vsub.s32 %v2134_v5, %v1706_v43 }
  0xcd   : > { %1065 = vmatmul.f32.vlgmr.msra.gmra.mxu3 %v2202_v62  ;;  %v957_v41 = vsel %vm489_vm6, %v1687_v36, %v888_v45  ;;  %v421_v4 = vsub.s32 %v2137_v6, %v1706_v43  ;;  %v785_v34 = vsel %vm583_vm10, %v1725_v51, %v716_v3  ;;  %v387_v37 = vsub.s32 %v1645_v14, %v1706_v43 }
  0xce   : > { %1021 = vmatpush.msra.mxu1 %v957_v41  ;;  %vm487_vm14 = vcmp.eq.s32.totalorder %v423_v24, 0  ;;  %vm551_vm15 = vcmp.eq.s32.totalorder %v423_v24, 1  ;;  %vm615_vm0 = vcmp.eq.s32.totalorder %v423_v24, 16  ;;  %v854_v25 = vsel %vm519_vm12, %v1708_v44, %v785_v34 }
  0xcf   : > { %vm679_vm1 = vcmp.eq.s32.totalorder %v423_v24, 17  ;;  %vm453_vm3 = vcmp.eq.s32.totalorder %v389_v33, 0  ;;  %vm517_vm4 = vcmp.eq.s32.totalorder %v389_v33, 1  ;;  %v923_v8 = vsel %vm455_vm11, %v1687_v36, %v854_v25 }
  0xd0   : > { %v748_v5 = vsel %vm679_vm1, %v1733_v56, 0.0  ;;  %vm581_vm2 = vcmp.eq.s32.totalorder %v389_v33, 16  ;;  %vm645_vm5 = vcmp.eq.s32.totalorder %v389_v33, 17  ;;  %1002 = vmatpush.msra.mxu0 %v923_v8  ;;  %vm485_vm6 = vcmp.eq.s32.totalorder %v421_v4, 0 }
  0xd1   : > { %v817_v6 = vsel %vm615_vm0, %v1725_v51, %v748_v5  ;;  %v714_v16 = vsel %vm645_vm5, %v1733_v56, 0.0  ;;  %vm549_vm7 = vcmp.eq.s32.totalorder %v421_v4, 1  ;;  %vm613_vm8 = vcmp.eq.s32.totalorder %v421_v4, 16 }
  0xd2   : > { %v886_v29 = vsel %vm551_vm15, %v1708_v44, %v817_v6  ;;  %v783_v9 = vsel %vm581_vm2, %v1725_v51, %v714_v16  ;;  %vm677_vm9 = vcmp.eq.s32.totalorder %v421_v4, 17  ;;  %v419_v17 = vsub.s32 %v2176_v50, %v1706_v43 }
  0xd3   : > { %v955_v10 = vsel %vm487_vm14, %v1687_v36, %v886_v29  ;;  %v852_v11 = vsel %vm517_vm4, %v1708_v44, %v783_v9  ;;  %v746_v12 = vsel %vm677_vm9, %v1733_v56, 0.0  ;;  %vm579_vm11 = vcmp.eq.s32.totalorder %v387_v37, 16 }
  0xd4   : > { %1022 = vmatpush.msra.mxu1 %v955_v10  ;;  %v921_v38 = vsel %vm453_vm3, %v1687_v36, %v852_v11  ;;  %v815_v27 = vsel %vm613_vm8, %v1725_v51, %v746_v12  ;;  %vm451_vm12 = vcmp.eq.s32.totalorder %v387_v37, 0  ;;  %vm515_vm10 = vcmp.eq.s32.totalorder %v387_v37, 1 }
  0xd5   : > { %1003 = vmatpush.msra.mxu0 %v921_v38  ;;  %v884_v28 = vsel %vm549_vm7, %v1708_v44, %v815_v27  ;;  %vm643_vm13 = vcmp.eq.s32.totalorder %v387_v37, 17  ;;  %vm547_vm14 = vcmp.eq.s32.totalorder %v419_v17, 1  ;;  %vm611_vm15 = vcmp.eq.s32.totalorder %v419_v17, 16 }
  0xd6   : > { %v953_v59 = vsel %vm485_vm6, %v1687_v36, %v884_v28  ;;  %v712_v14 = vsel %vm643_vm13, %v1733_v56, 0.0  ;;  %vm675_vm0 = vcmp.eq.s32.totalorder %v419_v17, 17  ;;  %vm483_vm1 = vcmp.eq.s32.totalorder %v419_v17, 0 }
  0xd7   : > { %1023 = vmatpush.msra.mxu1 %v953_v59  ;;  %v781_v35 = vsel %vm579_vm11, %v1725_v51, %v712_v14  ;;  %v744_v43 = vsel %vm675_vm0, %v1733_v56, 0.0  ;;  %vm1072_vm3 = vcmask 1043456  }
  0xd8   : > { %v850_v19 = vsel %vm515_vm10, %v1708_v44, %v781_v35  ;;  %v813_v20 = vsel %vm611_vm15, %v1725_v51, %v744_v43 }
  0xd9   : > { %v919_v21 = vsel %vm451_vm12, %v1687_v36, %v850_v19  ;;  %v882_v48 = vsel %vm547_vm14, %v1708_v44, %v813_v20 }
  0xda   : > { %1004 = vmatpush.msra.mxu0 %v919_v21  ;;  %v951_v32 = vsel %vm483_vm1, %v1687_v36, %v882_v48 }
  0xdb   : > { %1024 = vmatpush.msra.mxu1 %v951_v32  ;;  %1005 = vmatmul.f32.vlgmr.msra.gmra.mxu0 %v2192_v26 }
  0xdc   : > { %1025 = vmatmul.f32.vlgmr.msra.gmra.mxu1 %v2202_v62 }
 0x14b   : > { %v1046_v53 = vpop.f32.mrf.mxu2 }
 0x150   : > { %v1066_v39 = vpop.f32.mrf.mxu3 }
 0x151   : > { %v1067_v56 = vadd.f32 %v1066_v39, %v1046_v53 }
 0x153   : > { %v1071_v51 = vrot.slane %v1067_v56, 4 }
 0x158   : > { %v1006_v47 = vpop.f32.mrf.mxu0 }
 0x159   : > { %v1026_v36 = vpop.f32.mrf.mxu1 }
 0x15a   : > { %v1027_v44 = vadd.f32 %v1026_v36, %v1006_v47 }
 0x15c   : > { %v1073_v2 = vsel %vm1072_vm3, %v1027_v44, %v1071_v51 }
 0x15d   : > { %1075 = vst [vmem:[%s300_s21] sm:$0xff] %v1073_v2 }
 0x15e   : > { %1446 = shalt.err (!%p1443_p13)
}
 0x15f   : > { %1263 = dma.vmem_to_hbm [thread:$0]  (%p1582_p9), %s1094_s22, 128, %s1096_s23, %s1077_s15  }
 0x160 PF: > { %s2325_s1 = sld [smem:[#allocation13_spill]]  ;;  %s1107_s28 = sand.u32 1, %s1485_s12  }
 0x161   : > { %p1276_p0 = pnand %p1233_p12, %p1589_p11  ;;  %s1108_s20 = scalar_lea.sflag [#allocation4], %s1107_s28 }
 0x163   : > { %p1277_p1 = pneg %p1276_p0 }
 0x165   : > { %1480 = dma.done.wait (%p1277_p1), %s1108_s20, 128  }
 0x166   : > { %1482 = vsyncadd (%p1277_p1), %s1108_s20, 4294967168  ;;  %s22_s17 = sadd.s32 1, %s2325_s1   ;;  %s2326_s14 = sld [smem:[#allocation12_spill]] }
 0x167   : > { %p19_p2 = scmp.ge.s32.totalorder %s22_s17, 4   ;;  %s2327_s26 = sld [smem:[#allocation15_spill]] }
 0x168   : > { %s2328_s25 = sld [smem:[#allocation14_spill]]  ;;  %s2329_s12 = smov %s1489_s13 }
 0x169   : > { %s2332_s15 = smov %s1501_s16 }
 0x16a   :  { %21 = sbr.rel (!%p19_p2) target bundleno = 10 (0xa), region = 101 }
 0x16c   : > { %s2330_s13 = smov %s2326_s14 }
 0x16d   : > { %s2331_s14 = smov %s2327_s26 }
 0x16e   : > { %s2333_s16 = smov %s2328_s25 }
 0x16f   :  { %1114 = vsyncpa [#allocation3], 1 }
 0x170   :  { %1116 = vsyncpa [#allocation3 + $0x1], 1 }
 0x171   :  { %1117 = vsyncpa [#allocation6], 1 }
 0x172   :  { %1119 = vsyncpa [#allocation6 + $0x1], 1 }
 0x173   :  { %1120 = vsyncpa [#allocation4], 1 }
 0x174   :  { %1122 = vsyncpa [#allocation4 + $0x1], 1 }

</bundles_post_ra>
